<compile_context>
chip_gen: v7x
topology: tpu7x:2x2x1
jax: 0.10.0
libtpu: 0.0.40
codegen_flags: <defaults>
</compile_context>

<pallas_src>
import functools

import jax
import jax.numpy as jnp
from jax.experimental import pallas as pl
from jax.experimental.pallas import tpu as pltpu


def _subpixel_conv_kernel(xm_ref, xh_ref, w_ref, b_ref, alpha_ref, o_ref,
                          slab_ref, *, ksize, pad, row_tile):
    # xm_ref:    (row_tile, W+2p, Cin)   main rows of the padded image (bf16)
    # xh_ref:    (2p, W+2p, Cin)         bottom halo rows for this tile (bf16)
    # w_ref:     (K*K*Cin, Cout)         im2col-flattened conv weight (bf16)
    # b_ref:     (1, Cout)               conv bias (f32)
    # alpha_ref: (1,)                    PReLU slope (SMEM scalar, f32)
    # o_ref:     (row_tile*W, Cout)      conv+bias+PReLU rows of this tile (bf16)
    # slab_ref:  (row_tile, W, K*K*Cin)  im2col scratch (bf16)
    rt = row_tile
    K = ksize
    _, Wp, Cin = xm_ref.shape
    W = Wp - 2 * pad
    Cout = o_ref.shape[-1]

    # --- im2col: scatter the K*K taps into the slab (all-static slices). ---
    # Output row i of this tile reads padded rows i..i+2p; local rows [0, rt)
    # live in xm_ref, rows [rt, rt+2p) in xh_ref.  Every slab element is
    # overwritten each step, so no zero-init is needed.
    for kh in range(K):
        for kw in range(K):
            t = kh * K + kw
            if kh == 0:
                slab_ref[:, :, t * Cin:(t + 1) * Cin] = xm_ref[:, kw:kw + W, :]
            else:
                slab_ref[0:rt - kh, :, t * Cin:(t + 1) * Cin] = \
                    xm_ref[kh:rt, kw:kw + W, :]
                slab_ref[rt - kh:rt, :, t * Cin:(t + 1) * Cin] = \
                    xh_ref[0:kh, kw:kw + W, :]

    # --- one deep MXU matmul: (rt*W, K*K*Cin) @ (K*K*Cin, Cout), f32 acc. ---
    lhs = slab_ref[...].reshape(rt * W, K * K * Cin)
    acc = jnp.dot(lhs, w_ref[...], preferred_element_type=jnp.float32)
    acc = acc + b_ref[...]

    # PReLU (single shared slope) commutes with pixel-shuffle, so fuse it here.
    alpha = alpha_ref[0]
    acc = jnp.where(acc >= 0.0, acc, alpha * acc)
    o_ref[...] = acc.astype(o_ref.dtype)


def _target_rows():
    # v5e MXU is 4x128x128 -> target M ~ 128; v6e/v7x are 256-wide -> M ~ 256.
    try:
        kind = jax.devices()[0].device_kind.lower()
    except Exception:
        return 256
    return 128 if ("v5 lite" in kind or "v5e" in kind) else 256


def _pick_row_tile(H, W, pad, target_rows):
    # Divisors of H that are multiples of 2*pad (halo block alignment) with
    # (rt*W) % 8 == 0 (sublane-aligned output block); prefer >= 2 tiles and the
    # largest matmul M <= target_rows.
    step = 2 * pad
    cands = [d for d in range(step, H + 1, step)
             if H % d == 0 and (d * W) % 8 == 0]
    if not cands:
        return H
    good = [d for d in cands if d * W <= target_rows and H // d >= 2]
    if not good:
        good = [d for d in cands if d * W <= target_rows] or [min(cands)]
    return max(good)


def subpixel_convolutional_block(x_nchw, weight, bias, alpha, *,
                                 kernel_size=3, scaling_factor=2,
                                 row_tile=None, compute_dtype=jnp.bfloat16,
                                 out_dtype=jnp.bfloat16):
    """x_nchw: (N, C, H, W) -> (N, C, H*s, W*s), matching the PyTorch module.

    Output dtype defaults to bf16 (halves kernel writeback and the pixel-shuffle
    epilogue); pass out_dtype=jnp.float32 for exact module output dtype.
    """
    N, C, H, W = x_nchw.shape
    s = scaling_factor
    Cout = C * s * s
    K = kernel_size
    p = K // 2
    assert K % 2 == 1 and p >= 1, "odd kernel_size >= 3 expected"
    assert H % (2 * p) == 0, "H must be a multiple of 2*pad for halo row tiles"
    # TODO(synk): non-divisible H would need wrapper-side bottom padding of the image.

    if row_tile is None:
        row_tile = _pick_row_tile(H, W, p, _target_rows())
    rt = row_tile
    assert H % rt == 0 and rt % (2 * p) == 0 and (rt * W) % 8 == 0
    n_h = H // rt
    Wp = W + 2 * p
    hm = rt // (2 * p)   # halo block-index stride (halo block height = 2*p)

    # ---- glue (one cheap pass over the SMALL input tensor): ----
    # NCHW -> NHWC, bf16 cast, zero-pad H/W by p (no in-kernel pad/copy pass).
    x = jnp.transpose(x_nchw, (0, 2, 3, 1)).astype(compute_dtype)
    xp = jnp.pad(x, ((0, 0), (p, p), (p, p), (0, 0)))          # (N, H+2p, W+2p, C)
    # torch (Cout, Cin, K, K) -> im2col-flat (K*K*Cin, Cout), row = (kh*K+kw)*Cin+cin.
    w_flat = jnp.transpose(weight, (2, 3, 1, 0)).reshape(K * K * C, Cout)
    w_flat = w_flat.astype(compute_dtype)
    b2 = bias.reshape(1, Cout).astype(jnp.float32)
    a1 = jnp.asarray(alpha, jnp.float32).reshape(1)

    # ---- hot path: conv + bias + PReLU; grid = (batch, H tiles), both parallel ----
    conv_out = pl.pallas_call(
        functools.partial(_subpixel_conv_kernel, ksize=K, pad=p, row_tile=rt),
        out_shape=jax.ShapeDtypeStruct((N, H * W, Cout), out_dtype),
        grid=(N, n_h),
        in_specs=[
            # main rows: padded rows [h*rt, (h+1)*rt)
            pl.BlockSpec((None, rt, Wp, C), lambda n, h: (n, h, 0, 0)),
            # bottom halo: padded rows [(h+1)*rt, (h+1)*rt + 2p)
            pl.BlockSpec((None, 2 * p, Wp, C),
                         lambda n, h: (n, (h + 1) * hm, 0, 0)),
            pl.BlockSpec((K * K * C, Cout), lambda n, h: (0, 0)),
            pl.BlockSpec((1, Cout), lambda n, h: (0, 0)),
            pl.BlockSpec(memory_space=pltpu.MemorySpace.SMEM),   # alpha scalar
        ],
        out_specs=pl.BlockSpec((None, rt * W, Cout), lambda n, h: (n, h, 0)),
        scratch_shapes=[pltpu.VMEM((rt, W, K * K * C), compute_dtype)],
        compiler_params=pltpu.CompilerParams(
            dimension_semantics=("parallel", "parallel")),
    )(xp, xp, w_flat, b2, a1)

    # ---- glue: pixel shuffle + NHWC->NCHW folded into ONE (bf16) transpose pass ----
    # out[n, c, h*s+i, w*s+j] = conv_out[n, h*W + w, c*s*s + i*s + j]
    y = conv_out.reshape(N, H, W, C, s, s)
    y = jnp.transpose(y, (0, 3, 1, 4, 2, 5))
    return y.reshape(N, C, H * s, W * s)


if __name__ == "__main__":
    N, C, H, W = 2, 4, 16, 16
    K, s = 3, 2
    Cout = C * s * s

    key = jax.random.PRNGKey(0)
    kx, kw_, kb = jax.random.split(key, 3)
    x = jax.random.normal(kx, (N, C, H, W), jnp.float32)
    bound = 1.0 / float(C * K * K) ** 0.5
    weight = jax.random.uniform(kw_, (Cout, C, K, K), jnp.float32, -bound, bound)
    bias = jax.random.uniform(kb, (Cout,), jnp.float32, -bound, bound)
    alpha = 0.25  # nn.PReLU() default init

    out = subpixel_convolutional_block(x, weight, bias, alpha,
                                       kernel_size=K, scaling_factor=s)
    out = jax.block_until_ready(out)

    # Reference: same bf16 rounding of x/w, f32 conv (XLA) + bias + pixel shuffle
    # + PReLU, then the same bf16 output rounding the kernel applies.
    xr = x.astype(jnp.bfloat16).astype(jnp.float32)
    wr = weight.astype(jnp.bfloat16).astype(jnp.float32)
    ref_conv = jax.lax.conv_general_dilated(
        xr, wr, window_strides=(1, 1), padding="SAME",
        dimension_numbers=("NCHW", "OIHW", "NCHW"))
    ref_conv = ref_conv + bias.reshape(1, Cout, 1, 1)
    r = ref_conv.reshape(N, C, s, s, H, W)
    r = jnp.transpose(r, (0, 1, 4, 2, 5, 3)).reshape(N, C, H * s, W * s)
    ref = jnp.where(r >= 0.0, r, alpha * r)
    ref = ref.astype(jnp.bfloat16).astype(jnp.float32)

    assert out.shape == (N, C, H * s, W * s), out.shape
    out_f = out.astype(jnp.float32)
    err = float(jnp.abs(out_f - ref).max())
    assert jnp.allclose(out_f, ref, atol=2e-2, rtol=2e-2), err
    print("KERNEL_OK")
</pallas_src>

<mosaic_0001>
module attributes {stable_mosaic.version = 11 : i64} {
  func.func @_subpixel_conv_kernel(%arg0: i32, %arg1: i32, %arg2: memref<1x8x18x4xbf16, #tpu.memory_space<vmem>>, %arg3: memref<1x2x18x4xbf16, #tpu.memory_space<vmem>>, %arg4: memref<36x16xbf16, #tpu.memory_space<vmem>>, %arg5: memref<1x16xf32, #tpu.memory_space<vmem>>, %arg6: memref<1xf32, #tpu.memory_space<smem>>, %arg7: memref<1x128x16xbf16, #tpu.memory_space<vmem>>, %arg8: memref<8x16x36xbf16, #tpu.memory_space<vmem>>) attributes {dimension_semantics = [#tpu.dimension_semantics<parallel>, #tpu.dimension_semantics<parallel>], iteration_bounds = array<i64: 2, 2>, scalar_prefetch = 0 : i64, scratch_operands = 1 : i64, tpu.core_type = #tpu.core_type<tc>, window_params = [{transform_indices = @transform_0, window_bounds = array<i64: 1, 8, 18, 4>}, {transform_indices = @transform_1, window_bounds = array<i64: 1, 2, 18, 4>}, {pipeline_mode = #tpu.pipeline_mode<synchronous>, transform_indices = @transform_2, window_bounds = array<i64: 36, 16>}, {pipeline_mode = #tpu.pipeline_mode<synchronous>, transform_indices = @transform_3, window_bounds = array<i64: 1, 16>}, {transform_indices = @transform_4, window_bounds = array<i64: 1>}, {transform_indices = @transform_5, window_bounds = array<i64: 1, 128, 16>}]} {
    %c0 = arith.constant 0 : index
    %c0_0 = arith.constant 0 : index
    %c0_1 = arith.constant 0 : index
    %c0_2 = arith.constant 0 : index
    %0 = vector.load %arg2[%c0, %c0_0, %c0_1, %c0_2] : memref<1x8x18x4xbf16, #tpu.memory_space<vmem>>, vector<1x8x16x4xbf16>
    %1 = vector.shape_cast %0 : vector<1x8x16x4xbf16> to vector<8x16x4xbf16>
    %c0_3 = arith.constant 0 : index
    %c0_4 = arith.constant 0 : index
    %c0_5 = arith.constant 0 : index
    %2 = vector.load %arg8[%c0_3, %c0_4, %c0_5] : memref<8x16x36xbf16, #tpu.memory_space<vmem>>, vector<8x16x4xbf16>
    tpu.vector_store %arg8[%c0_3, %c0_4, %c0_5], %1 {strides = array<i32>} : memref<8x16x36xbf16, #tpu.memory_space<vmem>>, vector<8x16x4xbf16>,
    %c0_6 = arith.constant 0 : index
    %c0_7 = arith.constant 0 : index
    %c1 = arith.constant 1 : index
    %c0_8 = arith.constant 0 : index
    %3 = vector.load %arg2[%c0_6, %c0_7, %c1, %c0_8] : memref<1x8x18x4xbf16, #tpu.memory_space<vmem>>, vector<1x8x16x4xbf16>
    %4 = vector.shape_cast %3 : vector<1x8x16x4xbf16> to vector<8x16x4xbf16>
    %c0_9 = arith.constant 0 : index
    %c0_10 = arith.constant 0 : index
    %c4 = arith.constant 4 : index
    %5 = vector.load %arg8[%c0_9, %c0_10, %c4] : memref<8x16x36xbf16, #tpu.memory_space<vmem>>, vector<8x16x4xbf16>
    tpu.vector_store %arg8[%c0_9, %c0_10, %c4], %4 {strides = array<i32>} : memref<8x16x36xbf16, #tpu.memory_space<vmem>>, vector<8x16x4xbf16>,
    %c0_11 = arith.constant 0 : index
    %c0_12 = arith.constant 0 : index
    %c2 = arith.constant 2 : index
    %c0_13 = arith.constant 0 : index
    %6 = vector.load %arg2[%c0_11, %c0_12, %c2, %c0_13] : memref<1x8x18x4xbf16, #tpu.memory_space<vmem>>, vector<1x8x16x4xbf16>
    %7 = vector.shape_cast %6 : vector<1x8x16x4xbf16> to vector<8x16x4xbf16>
    %c0_14 = arith.constant 0 : index
    %c0_15 = arith.constant 0 : index
    %c8 = arith.constant 8 : index
    %8 = vector.load %arg8[%c0_14, %c0_15, %c8] : memref<8x16x36xbf16, #tpu.memory_space<vmem>>, vector<8x16x4xbf16>
    tpu.vector_store %arg8[%c0_14, %c0_15, %c8], %7 {strides = array<i32>} : memref<8x16x36xbf16, #tpu.memory_space<vmem>>, vector<8x16x4xbf16>,
    %c0_16 = arith.constant 0 : index
    %c1_17 = arith.constant 1 : index
    %c0_18 = arith.constant 0 : index
    %c0_19 = arith.constant 0 : index
    %9 = vector.load %arg2[%c0_16, %c1_17, %c0_18, %c0_19] : memref<1x8x18x4xbf16, #tpu.memory_space<vmem>>, vector<1x7x16x4xbf16>
    %10 = vector.shape_cast %9 : vector<1x7x16x4xbf16> to vector<7x16x4xbf16>
    %c0_20 = arith.constant 0 : index
    %c0_21 = arith.constant 0 : index
    %c12 = arith.constant 12 : index
    %11 = vector.load %arg8[%c0_20, %c0_21, %c12] : memref<8x16x36xbf16, #tpu.memory_space<vmem>>, vector<7x16x4xbf16>
    tpu.vector_store %arg8[%c0_20, %c0_21, %c12], %10 {strides = array<i32>} : memref<8x16x36xbf16, #tpu.memory_space<vmem>>, vector<7x16x4xbf16>,
    %c0_22 = arith.constant 0 : index
    %c0_23 = arith.constant 0 : index
    %c0_24 = arith.constant 0 : index
    %c0_25 = arith.constant 0 : index
    %12 = vector.load %arg3[%c0_22, %c0_23, %c0_24, %c0_25] : memref<1x2x18x4xbf16, #tpu.memory_space<vmem>>, vector<1x1x16x4xbf16>
    %13 = vector.shape_cast %12 : vector<1x1x16x4xbf16> to vector<1x16x4xbf16>
    %c7 = arith.constant 7 : index
    %c0_26 = arith.constant 0 : index
    %c12_27 = arith.constant 12 : index
    %14 = vector.load %arg8[%c7, %c0_26, %c12_27] : memref<8x16x36xbf16, #tpu.memory_space<vmem>>, vector<1x16x4xbf16>
    tpu.vector_store %arg8[%c7, %c0_26, %c12_27], %13 {strides = array<i32>} : memref<8x16x36xbf16, #tpu.memory_space<vmem>>, vector<1x16x4xbf16>,
    %c0_28 = arith.constant 0 : index
    %c1_29 = arith.constant 1 : index
    %c1_30 = arith.constant 1 : index
    %c0_31 = arith.constant 0 : index
    %15 = vector.load %arg2[%c0_28, %c1_29, %c1_30, %c0_31] : memref<1x8x18x4xbf16, #tpu.memory_space<vmem>>, vector<1x7x16x4xbf16>
    %16 = vector.shape_cast %15 : vector<1x7x16x4xbf16> to vector<7x16x4xbf16>
    %c0_32 = arith.constant 0 : index
    %c0_33 = arith.constant 0 : index
    %c16 = arith.constant 16 : index
    %17 = vector.load %arg8[%c0_32, %c0_33, %c16] : memref<8x16x36xbf16, #tpu.memory_space<vmem>>, vector<7x16x4xbf16>
    tpu.vector_store %arg8[%c0_32, %c0_33, %c16], %16 {strides = array<i32>} : memref<8x16x36xbf16, #tpu.memory_space<vmem>>, vector<7x16x4xbf16>,
    %c0_34 = arith.constant 0 : index
    %c0_35 = arith.constant 0 : index
    %c1_36 = arith.constant 1 : index
    %c0_37 = arith.constant 0 : index
    %18 = vector.load %arg3[%c0_34, %c0_35, %c1_36, %c0_37] : memref<1x2x18x4xbf16, #tpu.memory_space<vmem>>, vector<1x1x16x4xbf16>
    %19 = vector.shape_cast %18 : vector<1x1x16x4xbf16> to vector<1x16x4xbf16>
    %c7_38 = arith.constant 7 : index
    %c0_39 = arith.constant 0 : index
    %c16_40 = arith.constant 16 : index
    %20 = vector.load %arg8[%c7_38, %c0_39, %c16_40] : memref<8x16x36xbf16, #tpu.memory_space<vmem>>, vector<1x16x4xbf16>
    tpu.vector_store %arg8[%c7_38, %c0_39, %c16_40], %19 {strides = array<i32>} : memref<8x16x36xbf16, #tpu.memory_space<vmem>>, vector<1x16x4xbf16>,
    %c0_41 = arith.constant 0 : index
    %c1_42 = arith.constant 1 : index
    %c2_43 = arith.constant 2 : index
    %c0_44 = arith.constant 0 : index
    %21 = vector.load %arg2[%c0_41, %c1_42, %c2_43, %c0_44] : memref<1x8x18x4xbf16, #tpu.memory_space<vmem>>, vector<1x7x16x4xbf16>
    %22 = vector.shape_cast %21 : vector<1x7x16x4xbf16> to vector<7x16x4xbf16>
    %c0_45 = arith.constant 0 : index
    %c0_46 = arith.constant 0 : index
    %c20 = arith.constant 20 : index
    %23 = vector.load %arg8[%c0_45, %c0_46, %c20] : memref<8x16x36xbf16, #tpu.memory_space<vmem>>, vector<7x16x4xbf16>
    tpu.vector_store %arg8[%c0_45, %c0_46, %c20], %22 {strides = array<i32>} : memref<8x16x36xbf16, #tpu.memory_space<vmem>>, vector<7x16x4xbf16>,
    %c0_47 = arith.constant 0 : index
    %c0_48 = arith.constant 0 : index
    %c2_49 = arith.constant 2 : index
    %c0_50 = arith.constant 0 : index
    %24 = vector.load %arg3[%c0_47, %c0_48, %c2_49, %c0_50] : memref<1x2x18x4xbf16, #tpu.memory_space<vmem>>, vector<1x1x16x4xbf16>
    %25 = vector.shape_cast %24 : vector<1x1x16x4xbf16> to vector<1x16x4xbf16>
    %c7_51 = arith.constant 7 : index
    %c0_52 = arith.constant 0 : index
    %c20_53 = arith.constant 20 : index
    %26 = vector.load %arg8[%c7_51, %c0_52, %c20_53] : memref<8x16x36xbf16, #tpu.memory_space<vmem>>, vector<1x16x4xbf16>
    tpu.vector_store %arg8[%c7_51, %c0_52, %c20_53], %25 {strides = array<i32>} : memref<8x16x36xbf16, #tpu.memory_space<vmem>>, vector<1x16x4xbf16>,
    %c0_54 = arith.constant 0 : index
    %c2_55 = arith.constant 2 : index
    %c0_56 = arith.constant 0 : index
    %c0_57 = arith.constant 0 : index
    %27 = vector.load %arg2[%c0_54, %c2_55, %c0_56, %c0_57] : memref<1x8x18x4xbf16, #tpu.memory_space<vmem>>, vector<1x6x16x4xbf16>
    %28 = vector.shape_cast %27 : vector<1x6x16x4xbf16> to vector<6x16x4xbf16>
    %c0_58 = arith.constant 0 : index
    %c0_59 = arith.constant 0 : index
    %c24 = arith.constant 24 : index
    %29 = vector.load %arg8[%c0_58, %c0_59, %c24] : memref<8x16x36xbf16, #tpu.memory_space<vmem>>, vector<6x16x4xbf16>
    tpu.vector_store %arg8[%c0_58, %c0_59, %c24], %28 {strides = array<i32>} : memref<8x16x36xbf16, #tpu.memory_space<vmem>>, vector<6x16x4xbf16>,
    %c0_60 = arith.constant 0 : index
    %c0_61 = arith.constant 0 : index
    %c0_62 = arith.constant 0 : index
    %c0_63 = arith.constant 0 : index
    %30 = vector.load %arg3[%c0_60, %c0_61, %c0_62, %c0_63] : memref<1x2x18x4xbf16, #tpu.memory_space<vmem>>, vector<1x2x16x4xbf16>
    %31 = vector.shape_cast %30 : vector<1x2x16x4xbf16> to vector<2x16x4xbf16>
    %c6 = arith.constant 6 : index
    %c0_64 = arith.constant 0 : index
    %c24_65 = arith.constant 24 : index
    %32 = vector.load %arg8[%c6, %c0_64, %c24_65] : memref<8x16x36xbf16, #tpu.memory_space<vmem>>, vector<2x16x4xbf16>
    tpu.vector_store %arg8[%c6, %c0_64, %c24_65], %31 {strides = array<i32>} : memref<8x16x36xbf16, #tpu.memory_space<vmem>>, vector<2x16x4xbf16>,
    %c0_66 = arith.constant 0 : index
    %c2_67 = arith.constant 2 : index
    %c1_68 = arith.constant 1 : index
    %c0_69 = arith.constant 0 : index
    %33 = vector.load %arg2[%c0_66, %c2_67, %c1_68, %c0_69] : memref<1x8x18x4xbf16, #tpu.memory_space<vmem>>, vector<1x6x16x4xbf16>
    %34 = vector.shape_cast %33 : vector<1x6x16x4xbf16> to vector<6x16x4xbf16>
    %c0_70 = arith.constant 0 : index
    %c0_71 = arith.constant 0 : index
    %c28 = arith.constant 28 : index
    %35 = vector.load %arg8[%c0_70, %c0_71, %c28] : memref<8x16x36xbf16, #tpu.memory_space<vmem>>, vector<6x16x4xbf16>
    tpu.vector_store %arg8[%c0_70, %c0_71, %c28], %34 {strides = array<i32>} : memref<8x16x36xbf16, #tpu.memory_space<vmem>>, vector<6x16x4xbf16>,
    %c0_72 = arith.constant 0 : index
    %c0_73 = arith.constant 0 : index
    %c1_74 = arith.constant 1 : index
    %c0_75 = arith.constant 0 : index
    %36 = vector.load %arg3[%c0_72, %c0_73, %c1_74, %c0_75] : memref<1x2x18x4xbf16, #tpu.memory_space<vmem>>, vector<1x2x16x4xbf16>
    %37 = vector.shape_cast %36 : vector<1x2x16x4xbf16> to vector<2x16x4xbf16>
    %c6_76 = arith.constant 6 : index
    %c0_77 = arith.constant 0 : index
    %c28_78 = arith.constant 28 : index
    %38 = vector.load %arg8[%c6_76, %c0_77, %c28_78] : memref<8x16x36xbf16, #tpu.memory_space<vmem>>, vector<2x16x4xbf16>
    tpu.vector_store %arg8[%c6_76, %c0_77, %c28_78], %37 {strides = array<i32>} : memref<8x16x36xbf16, #tpu.memory_space<vmem>>, vector<2x16x4xbf16>,
    %c0_79 = arith.constant 0 : index
    %c2_80 = arith.constant 2 : index
    %c2_81 = arith.constant 2 : index
    %c0_82 = arith.constant 0 : index
    %39 = vector.load %arg2[%c0_79, %c2_80, %c2_81, %c0_82] : memref<1x8x18x4xbf16, #tpu.memory_space<vmem>>, vector<1x6x16x4xbf16>
    %40 = vector.shape_cast %39 : vector<1x6x16x4xbf16> to vector<6x16x4xbf16>
    %c0_83 = arith.constant 0 : index
    %c0_84 = arith.constant 0 : index
    %c32 = arith.constant 32 : index
    %41 = vector.load %arg8[%c0_83, %c0_84, %c32] : memref<8x16x36xbf16, #tpu.memory_space<vmem>>, vector<6x16x4xbf16>
    tpu.vector_store %arg8[%c0_83, %c0_84, %c32], %40 {strides = array<i32>} : memref<8x16x36xbf16, #tpu.memory_space<vmem>>, vector<6x16x4xbf16>,
    %c0_85 = arith.constant 0 : index
    %c0_86 = arith.constant 0 : index
    %c2_87 = arith.constant 2 : index
    %c0_88 = arith.constant 0 : index
    %42 = vector.load %arg3[%c0_85, %c0_86, %c2_87, %c0_88] : memref<1x2x18x4xbf16, #tpu.memory_space<vmem>>, vector<1x2x16x4xbf16>
    %43 = vector.shape_cast %42 : vector<1x2x16x4xbf16> to vector<2x16x4xbf16>
    %c6_89 = arith.constant 6 : index
    %c0_90 = arith.constant 0 : index
    %c32_91 = arith.constant 32 : index
    %44 = vector.load %arg8[%c6_89, %c0_90, %c32_91] : memref<8x16x36xbf16, #tpu.memory_space<vmem>>, vector<2x16x4xbf16>
    tpu.vector_store %arg8[%c6_89, %c0_90, %c32_91], %43 {strides = array<i32>} : memref<8x16x36xbf16, #tpu.memory_space<vmem>>, vector<2x16x4xbf16>,
    %c0_92 = arith.constant 0 : index
    %c0_93 = arith.constant 0 : index
    %c0_94 = arith.constant 0 : index
    %45 = vector.load %arg8[%c0_92, %c0_93, %c0_94] : memref<8x16x36xbf16, #tpu.memory_space<vmem>>, vector<8x16x36xbf16>
    %46 = vector.shape_cast %45 : vector<8x16x36xbf16> to vector<128x36xbf16>
    %c0_95 = arith.constant 0 : index
    %c0_96 = arith.constant 0 : index
    %47 = vector.load %arg4[%c0_95, %c0_96] : memref<36x16xbf16, #tpu.memory_space<vmem>>, vector<36x16xbf16>
    %cst = arith.constant dense<0.000000e+00> : vector<128x16xf32>
    %48 = tpu.matmul %46, %47, %cst {dimension_numbers = #tpu.dot_dimension_numbers<[1], [0], [0], [1], [0, 0, 1, 1], [], []>} : vector<128x36xbf16>, vector<36x16xbf16>, vector<128x16xf32> -> vector<128x16xf32>
    %c0_97 = arith.constant 0 : index
    %c0_98 = arith.constant 0 : index
    %49 = vector.load %arg5[%c0_97, %c0_98] : memref<1x16xf32, #tpu.memory_space<vmem>>, vector<1x16xf32>
    %50 = vector.broadcast %49 : vector<1x16xf32> to vector<128x16xf32>
    %51 = arith.addf %48, %50 : vector<128x16xf32>
    %c0_99 = arith.constant 0 : index
    %52 = memref.load %arg6[%c0_99] : memref<1xf32, #tpu.memory_space<smem>>
    %cst_100 = arith.constant 0.000000e+00 : f32
    %53 = vector.broadcast %cst_100 : f32 to vector<128x16xf32>
    %54 = arith.cmpf oge, %51, %53 : vector<128x16xf32>
    %55 = vector.broadcast %52 : f32 to vector<128x16xf32>
    %56 = arith.mulf %55, %51 : vector<128x16xf32>
    %57 = arith.select %54, %51, %56 : vector<128x16xi1>, vector<128x16xf32>
    %58 = arith.truncf %57 : vector<128x16xf32> to vector<128x16xbf16>
    %c0_101 = arith.constant 0 : index
    %c0_102 = arith.constant 0 : index
    %c0_103 = arith.constant 0 : index
    %59 = vector.load %arg7[%c0_101, %c0_102, %c0_103] : memref<1x128x16xbf16, #tpu.memory_space<vmem>>, vector<1x128x16xbf16>
    %60 = vector.shape_cast %59 : vector<1x128x16xbf16> to vector<128x16xbf16>
    %61 = vector.shape_cast %58 : vector<128x16xbf16> to vector<1x128x16xbf16>
    tpu.vector_store %arg7[%c0_101, %c0_102, %c0_103], %61 {strides = array<i32>} : memref<1x128x16xbf16, #tpu.memory_space<vmem>>, vector<1x128x16xbf16>,
    return
  }
  func.func @transform_0(%arg0: i32, %arg1: i32) -> (i32, i32, i32, i32) {
    %c0_i32 = arith.constant 0 : i32
    %c0_i32_0 = arith.constant 0 : i32
    %c0_i32_1 = arith.constant 0 : i32
    return %arg0, %arg1, %c0_i32, %c0_i32_0 : i32, i32, i32, i32
  }
  func.func @transform_1(%arg0: i32, %arg1: i32) -> (i32, i32, i32, i32) {
    %c1_i32 = arith.constant 1 : i32
    %0 = arith.addi %arg1, %c1_i32 : i32
    %c4_i32 = arith.constant 4 : i32
    %1 = arith.muli %0, %c4_i32 : i32
    %c0_i32 = arith.constant 0 : i32
    %c0_i32_0 = arith.constant 0 : i32
    %c0_i32_1 = arith.constant 0 : i32
    return %arg0, %1, %c0_i32, %c0_i32_0 : i32, i32, i32, i32
  }
  func.func @transform_2(%arg0: i32, %arg1: i32) -> (i32, i32) {
    %c0_i32 = arith.constant 0 : i32
    %c0_i32_0 = arith.constant 0 : i32
    %c0_i32_1 = arith.constant 0 : i32
    return %c0_i32, %c0_i32_0 : i32, i32
  }
  func.func @transform_3(%arg0: i32, %arg1: i32) -> (i32, i32) {
    %c0_i32 = arith.constant 0 : i32
    %c0_i32_0 = arith.constant 0 : i32
    %c0_i32_1 = arith.constant 0 : i32
    return %c0_i32, %c0_i32_0 : i32, i32
  }
  func.func @transform_4(%arg0: i32, %arg1: i32) -> i32 {
    %c0_i32 = arith.constant 0 : i32
    %c0_i32_0 = arith.constant 0 : i32
    return %c0_i32 : i32
  }
  func.func @transform_5(%arg0: i32, %arg1: i32) -> (i32, i32, i32) {
    %c0_i32 = arith.constant 0 : i32
    %c0_i32_0 = arith.constant 0 : i32
    return %arg0, %arg1, %c0_i32 : i32, i32, i32
  }
}

</mosaic_0001>

<bundles_post_ra>
// kernel: tpu_custom_call.1
= control target key start
LH: loop header
LB: loop body
LE: loop exit
PB: predicated region body
PF: predicated region fallthrough
CT: control target
= control target key end

     0   :  { %s2686_s20 = smov 0   ;;  %s2688_s21 = smov 0   ;;  %s3181_s0 = inlined_call_operand.vmem [shape: bf16[2,18,18,4], index: 0, kind: input, shape index: {}]   ;;  %s3182_s1 = inlined_call_operand.vmem [shape: bf16[2,18,18,4], index: 1, kind: input, shape index: {}]   ;;  %s3183_s2 = inlined_call_operand.vmem [shape: bf16[36,16], index: 2, kind: input, shape index: {}]   ;;  %s3184_s3 = inlined_call_operand.vmem [shape: f32[1,16], index: 3, kind: input, shape index: {}]   ;;  %s3185_s4 = inlined_call_operand.<no memory space> [shape: f32[1], index: 4, kind: input, shape index: {}]   ;;  %s3186_s5 = inlined_call_operand.vmem [shape: bf16[2,256,16], index: 5, kind: output, shape index: {}]  }
   0x1   :  { %10 = sst [smem:[#allocation3]] %s3185_s4  ;;  %s2690_s22 = smov 0  }
   0x2   :  { %s2692_s23 = smov 0   ;;  %s2694_s24 = smov 0  }
   0x3 LB: > { %s25_s4 = sadd.s32 1, %s2635_s22  ;;  %s28_s25 = sadd.s32 1, %s2639_s23  ;;  %s2643_s24 = sphi %s2694_s24, %s16_s24   ;;  %s2639_s23 = sphi %s2692_s23, %s3191_s23   ;;  %s2635_s22 = sphi %s2690_s22, %s3190_s22   ;;  %s2631_s21 = sphi %s2688_s21, %s3189_s21   ;;  %s2627_s20 = sphi %s2686_s20, %s3188_s20  }
   0x4   : > { %p26_p0 = scmp.ge.s32.totalorder %s25_s4, 2  ;;  %p2102_p1 = scmp.ge.s32.totalorder %s2643_s24, 1 }
   0x5   : > { %p246_p2 = scmp.lt.s32.totalorder %s2643_s24, 5 }
   0x6   : > { %s3193_s4 = smov (%p26_p0, %s25_s4), 0  ;;  %s3195_s25 = smov (!%p26_p0, %s28_s25), %s2639_s23 }
   0x7   : > { %p247_p3 = pnand %p2102_p1, %p246_p2  ;;  %p30_p4 = scmp.ge.s32.totalorder %s3195_s25, 2 }
   0x8   : > { %s2719_s26 = sshll.u32 (!%p247_p3), %s2627_s20, 3  ;;  %p306_p5 = scmp.lt.s32.totalorder (!%p247_p3), %s2631_s21, 1  ;;  %vm726_vm0 = vcmask (!%p247_p3), 1046528   ;;  %vm508_vm1 = vsmask.f32 (!%p247_p3), 7424  ;;  %vm411_vm2 = vcmask (!%p247_p3), 31744  }
   0x9   : > { %s3197_s25 = smov (%p30_p4, %s3195_s25), 0  ;;  %250 = sbr.rel (%p247_p3) target bundleno = 499 (0x1f3), region = 40 }
   0xa   : > { %p308_p6 = scmp.lt.s32.totalorder (!%p247_p3), %s2719_s26, 17  ;;  %s2645_s10 = smov (!%p247_p3), 12   ;;  %vm629_vm3 = vcmask (!%p247_p3), 64544   ;;  %vm775_vm4 = vcmask (!%p247_p3), 97344   ;;  %vm855_vm5 = vcmask (!%p247_p3), 130144   ;;  %vm1750_vm6 = vcmask (!%p247_p3), 1041408  }
   0xb   : > { %s2646_s11 = smov (!%p247_p3), 8   ;;  %s2647_s12 = smov (!%p247_p3), 4   ;;  %vm1057_vm7 = vcmask (!%p247_p3), 162944   ;;  %vm1211_vm8 = vcmask (!%p247_p3), 195744   ;;  %vm1298_vm9 = vcmask (!%p247_p3), 228544   ;;  %vm1484_vm10 = vcmask (!%p247_p3), 261344  }
   0xc   : > { %s2648_s13 = smov (!%p247_p3), 16   ;;  %s2649_s14 = smov (!%p247_p3), 20   ;;  %vm1647_vm11 = vcmask (!%p247_p3), 294144   ;;  %vm1725_vm12 = vcmask (!%p247_p3), 293888   ;;  %vm1965_vm13 = vcmask (!%p247_p3), 125952  }
   0xd   : > { %s2389_s15 = sadd.s32 (!%p247_p3), 8, %s2719_s26  ;;  %s2650_s16 = smov (!%p247_p3), 24  }
   0xe   : > { %p2822_p7 = scmp.lt.s32.totalorder (!%p247_p3), %s2389_s15, 17  ;;  %s2651_s18 = smov (!%p247_p3), 28  }
   0xf   : > { %s2652_s19 = smov (!%p247_p3), 32  }
  0x10   : > { %s3199_s21 = smov (!%p306_p5, %s2631_s21), 1  ;;  %s3201_s15 = smov (!%p2822_p7, %s2389_s15), 17 }
  0x11   : > { %s309_s27 = scalar_select %p308_p6, %s2719_s26, 17 }
  0x12   : > { %s2432_s28 = smul.u32 54, %s3199_s21 }
  0x13   : > { %s2431_s29 = smul.u32 3, %s309_s27 }
  0x14   : > { %s2433_s26 = smul.u32 3, %s3201_s15  ;;  %s2109_s15 = sshll.u32 %s3199_s21, 5 }
  0x15   : > { %s312_s30 = sadd.s32 %s2432_s28, %s2431_s29 }
  0x16   : > { %s2104_s6 = sshll.u32 %s312_s30, 2  ;;  %s330_s27 = sadd.s32 %s2433_s26, %s2432_s28 }
  0x17   : > { %s2731_s9 = scalar_lea.vmem %s3181_s0, %s2104_s6  ;;  %s2107_s29 = sshll.u32 %s330_s27, 2 }
  0x18   : > { %v2482_v0 = vld [vmem:[%s2731_s9 + $0x3c] sm:$0xff]   ;;  %v2483_v1 = vld [vmem:[%s2731_s9 + $0xc] sm:$0xff]   ;;  %v2487_v5 = vld [vmem:[%s2731_s9 + $0x38] ss:$0 sps:$4 sm:$0x11]   ;;  %s2890_s6 = scalar_lea.vmem %s3182_s1, %s2107_s29 }
  0x19   : > { %842 = vrot.lane.b32.xlu1 %v2482_v0, %s2645_s10  ;;  %v2484_v2 = vld [vmem:[%s2731_s9 + $0x48] sm:$0xff]   ;;  %834 = vrot.lane.b32.xlu0 %v2483_v1, %s2645_s10  ;;  %v2485_v3 = vld [vmem:[%s2731_s9 + $0x18] sm:$0xff]   ;;  %v740_v8 = vrot.slane %v2487_v5, 1 }
  0x1a   : > { %v2486_v4 = vld [vmem:[%s2731_s9 + $0x30] sm:$0xfe]   ;;  %v2488_v9 = vld [vmem:[%s2731_s9] sm:$0xfe]  }
  0x1b   : > { %v2494_v6 = vld [vmem:[%s2731_s9 + $0xc] sm:$0xff]   ;;  %v739_v7 = vrot.slane %v2486_v4, 1  ;;  %v2489_v10 = vld [vmem:[%s2731_s9 + $0x8] ss:$0 sps:$4 sm:$0x11]   ;;  %v727_v13 = vrot.slane %v2488_v9, 1 }
  0x1c   : > { %v522_v11 = vshrl.u32 %v2494_v6, 16  ;;  %v2490_v14 = vld [vmem:[%s2731_s9 + $0x3c] sm:$0xfe]   ;;  %v524_v15 = vshll.u32 %v2494_v6, 16  ;;  %v728_v16 = vrot.slane %v2489_v10, 1  ;;  %v2500_v40 = vld [vmem:[%s2731_s9 + $0x30] sm:$0xff]  }
  0x1d   : > { %844 = vrot.lane.b32.xlu1 %v2484_v2, %s2645_s10  ;;  %836 = vrot.lane.b32.xlu0 %v2485_v3, %s2645_s10  ;;  %v741_v12 = vsel %vm726_vm0, %v739_v7, %v740_v8  ;;  %v2491_v17 = vld [vmem:[%s2731_s9 + $0x44] ss:$0 sps:$4 sm:$0x11]   ;;  %v742_v18 = vrot.slane %v2490_v14, 1  ;;  %v2492_v22 = vld [vmem:[%s2731_s9 + $0xc] sm:$0xfe]  }
  0x1e   : > { %v526_v19 = vrot.slane %v524_v15, 1  ;;  %v729_v20 = vsel %vm726_vm0, %v727_v13, %v728_v16  ;;  %v743_v21 = vrot.slane %v2491_v17, 1  ;;  %v2493_v23 = vld [vmem:[%s2731_s9 + $0x14] ss:$0 sps:$4 sm:$0x11]   ;;  %v730_v25 = vrot.slane %v2492_v22, 1 }
  0x1f   : > { %v731_v26 = vrot.slane %v2493_v23, 1  ;;  %v2495_v27 = vld [vmem:[%s2731_s9 + $0x14] ss:$0 sps:$4 sm:$0x11]   ;;  %v2496_v28 = vld [vmem:[%s2731_s9] sm:$0xff]   ;;  %v558_v48 = vshrl.u32 %v2500_v40, 16 }
  0x20   : > { %v744_v24 = vsel %vm726_vm0, %v742_v18, %v743_v21  ;;  %v527_v29 = vor.u32 %v526_v19, %v522_v11  ;;  %v529_v31 = vshll.u32 %v2495_v27, 16  ;;  %v2497_v32 = vld [vmem:[%s2731_s9 + $0x8] ss:$0 sps:$4 sm:$0x11]   ;;  %v510_v33 = vshrl.u32 %v2496_v28, 16  ;;  %v2498_v38 = vld [vmem:[%s2731_s9 + $0x3c] sm:$0xff]  }
  0x21   : > { %759 = vrot.lane.b32.xlu1 %v741_v12, %s2646_s11  ;;  %751 = vrot.lane.b32.xlu0 %v729_v20, %s2646_s11  ;;  %v732_v30 = vsel %vm726_vm0, %v730_v25, %v731_v26  ;;  %v512_v34 = vshll.u32 %v2496_v28, 16  ;;  %v517_v37 = vshll.u32 %v2497_v32, 16  ;;  %v2499_v39 = vld [vmem:[%s2731_s9 + $0x44] ss:$0 sps:$4 sm:$0x11]   ;;  %v570_v44 = vshrl.u32 %v2498_v38, 16 }
  0x22   : > { %v531_v35 = vrot.slane %v529_v31, 1  ;;  %v572_v45 = vshll.u32 %v2498_v38, 16  ;;  %v577_v46 = vshll.u32 %v2499_v39, 16  ;;  %v2501_v47 = vld [vmem:[%s2731_s9 + $0x38] ss:$0 sps:$4 sm:$0x11]  }
  0x23   : > { %v514_v36 = vrot.slane %v512_v34, 1  ;;  %v519_v43 = vrot.slane %v517_v37, 1  ;;  %v560_v50 = vshll.u32 %v2500_v40, 16  ;;  %v2502_v51 = vld [vmem:[%s2731_s9 + $0x3c] sm:$0xff]   ;;  %v565_v54 = vshll.u32 %v2501_v47, 16  ;;  %v2504_v59 = vld [vmem:[%s2731_s9 + $0xc] sm:$0xff]  }
  0x24   : > { %v532_v41 = vsel %vm508_vm1, %v527_v29, %v531_v35  ;;  %v574_v52 = vrot.slane %v572_v45, 1  ;;  %v579_v53 = vrot.slane %v577_v46, 1  ;;  %v2503_v55 = vld [vmem:[%s2731_s9 + $0x44] ss:$0 sps:$4 sm:$0x11]   ;;  %v1001_v57 = vshrl.u32 %v2502_v51, 16 }
  0x25   : > { %761 = vrot.lane.b32.xlu1 %v744_v24, %s2646_s11  ;;  %753 = vrot.lane.b32.xlu0 %v732_v30, %s2646_s11  ;;  %v515_v42 = vor.u32 %v514_v36, %v510_v33  ;;  %v562_v56 = vrot.slane %v560_v50, 1  ;;  %v1003_v58 = vshll.u32 %v2502_v51, 16  ;;  %v567_v61 = vrot.slane %v565_v54, 1  ;;  %v2505_v1 = vld [vmem:[%s2731_s9 + $0x14] ss:$0 sps:$4 sm:$0x11]  }
  0x26   : > { %v575_v60 = vor.u32 %v574_v52, %v570_v44  ;;  %v1008_v62 = vshll.u32 %v2503_v55, 16  ;;  %v953_v2 = vshrl.u32 %v2504_v59, 16  ;;  %v955_v3 = vshll.u32 %v2504_v59, 16  ;;  %v2506_v6 = vld [vmem:[%s2731_s9 + $0x48] sm:$0xff]   ;;  %v2508_v14 = vld [vmem:[%s2731_s9 + $0x18] sm:$0xff]  }
  0x27   : > { %v520_v49 = vsel %vm508_vm1, %v515_v42, %v519_v43  ;;  %v563_v63 = vor.u32 %v562_v56, %v558_v48  ;;  %v1005_v0 = vrot.slane %v1003_v58, 1  ;;  %v960_v10 = vshll.u32 %v2505_v1, 16  ;;  %v2507_v11 = vld [vmem:[%s2731_s9 + $0x50] ss:$0 sps:$4 sm:$0x11]   ;;  %v2522_v50 = vld [vmem:[%s2731_s9 + $0x48] sm:$0xff]  }
  0x28   : > { %v580_v4 = vsel %vm508_vm1, %v575_v60, %v579_v53  ;;  %v1010_v5 = vrot.slane %v1008_v62, 1  ;;  %v957_v9 = vrot.slane %v955_v3, 1  ;;  %v1013_v12 = vshrl.u32 %v2506_v6, 16  ;;  %v2509_v20 = vld [vmem:[%s2731_s9 + $0x20] ss:$0 sps:$4 sm:$0x11]  }
  0x29   : > { %607 = vrot.lane.b32.xlu1 %v532_v41, %s2647_s12  ;;  %605 = vrot.lane.b32.xlu0 %v520_v49, %s2647_s12  ;;  %v568_v7 = vsel %vm508_vm1, %v563_v63, %v567_v61  ;;  %v1006_v8 = vor.u32 %v1005_v0, %v1001_v57  ;;  %v1015_v13 = vshll.u32 %v2506_v6, 16  ;;  %v962_v17 = vrot.slane %v960_v10, 1  ;;  %v2510_v27 = vld [vmem:[%s2731_s9 + $0x3c] sm:$0xfe]   ;;  %v2512_v35 = vld [vmem:[%s2731_s9 + $0xc] sm:$0xfe]  }
  0x2a   : > { %v958_v16 = vor.u32 %v957_v9, %v953_v2  ;;  %v1020_v19 = vshll.u32 %v2507_v11, 16  ;;  %v965_v22 = vshrl.u32 %v2508_v14, 16  ;;  %v967_v23 = vshll.u32 %v2508_v14, 16  ;;  %v2511_v29 = vld [vmem:[%s2731_s9 + $0x44] ss:$0 sps:$4 sm:$0x11]  }
  0x2b   : > { %v1011_v15 = vsel %vm508_vm1, %v1006_v8, %v1010_v5  ;;  %v1017_v18 = vrot.slane %v1015_v13, 1  ;;  %v972_v26 = vshll.u32 %v2509_v20, 16  ;;  %v1181_v32 = vrot.slane %v2510_v27, 1  ;;  %v2513_v36 = vld [vmem:[%s2731_s9 + $0x14] ss:$0 sps:$4 sm:$0x11]  }
  0x2c   : > { %v963_v21 = vsel %vm508_vm1, %v958_v16, %v962_v17  ;;  %v1022_v25 = vrot.slane %v1020_v19, 1  ;;  %v969_v28 = vrot.slane %v967_v23, 1  ;;  %v1182_v34 = vrot.slane %v2511_v29, 1  ;;  %v2514_v41 = vld [vmem:[%s2731_s9 + $0x48] sm:$0xfe]   ;;  %v2524_v53 = vld [vmem:[%s2731_s9 + $0x18] sm:$0xff]  }
  0x2d   : > { %615 = vrot.lane.b32.xlu1 %v580_v4, %s2647_s12  ;;  %613 = vrot.lane.b32.xlu0 %v568_v7, %s2647_s12  ;;  %v1018_v24 = vor.u32 %v1017_v18, %v1013_v12  ;;  %v974_v31 = vrot.slane %v972_v26, 1  ;;  %v1169_v39 = vrot.slane %v2512_v35, 1  ;;  %v1170_v40 = vrot.slane %v2513_v36, 1  ;;  %v2515_v42 = vld [vmem:[%s2731_s9 + $0x50] ss:$0 sps:$4 sm:$0x11]  }
  0x2e   : > { %v970_v33 = vor.u32 %v969_v28, %v965_v22  ;;  %v1183_v38 = vsel %vm726_vm0, %v1181_v32, %v1182_v34  ;;  %v1184_v44 = vrot.slane %v2514_v41, 1  ;;  %v2516_v45 = vld [vmem:[%s2731_s9 + $0x18] sm:$0xfe]   ;;  %v1185_v46 = vrot.slane %v2515_v42, 1  ;;  %v2518_v49 = vld [vmem:[%s2731_s9 + $0x48] sm:$0xff]  }
  0x2f   : > { %v1023_v30 = vsel %vm508_vm1, %v1018_v24, %v1022_v25  ;;  %v1171_v43 = vsel %vm726_vm0, %v1169_v39, %v1170_v40  ;;  %v2517_v47 = vld [vmem:[%s2731_s9 + $0x20] ss:$0 sps:$4 sm:$0x11]   ;;  %v1172_v48 = vrot.slane %v2516_v45, 1  ;;  %v2519_v55 = vld [vmem:[%s2731_s9 + $0x18] sm:$0xff]   ;;  %v1443_v58 = vshrl.u32 %v2522_v50, 16 }
  0x30   : > { %v975_v37 = vsel %vm508_vm1, %v970_v33, %v974_v31  ;;  %v1186_v51 = vsel %vm726_vm0, %v1184_v44, %v1185_v46  ;;  %v1173_v52 = vrot.slane %v2517_v47, 1  ;;  %v2520_v56 = vld [vmem:[%s2731_s9 + $0x54] sm:$0xff]   ;;  %v2523_v57 = vld [vmem:[%s2731_s9 + $0x50] ss:$0 sps:$4 sm:$0x11]   ;;  %v1445_v59 = vshll.u32 %v2522_v50, 16 }
  0x31   : > { %1044 = vrot.lane.b32.xlu1 %v1011_v15, %s2648_s13  ;;  %1036 = vrot.lane.b32.xlu0 %v963_v21, %s2648_s13  ;;  %v1395_v60 = vshrl.u32 %v2524_v53, 16  ;;  %v1450_v62 = vshll.u32 %v2523_v57, 16  ;;  %v2525_v63 = vld [vmem:[%s2731_s9 + $0x20] ss:$0 sps:$4 sm:$0x11]   ;;  %v1397_v0 = vshll.u32 %v2524_v53, 16 }
  0x32   : > { %v1174_v54 = vsel %vm726_vm0, %v1172_v48, %v1173_v52  ;;  %v1447_v61 = vrot.slane %v1445_v59, 1  ;;  %v2521_v1 = vld [vmem:[%s2731_s9 + $0x24] sm:$0xff]   ;;  %v1402_v5 = vshll.u32 %v2525_v63, 16  ;;  %v2526_v6 = vld [vmem:[%s2731_s9 + $0x54] sm:$0xff]  }
  0x33   : > { %v1452_v3 = vrot.slane %v1450_v62, 1  ;;  %v1399_v4 = vrot.slane %v1397_v0, 1  ;;  %v2527_v7 = vld [vmem:[%s2731_s9 + $0x5c] ss:$0 sps:$4 sm:$0x11]   ;;  %v2528_v8 = vld [vmem:[%s2731_s9 + $0x24] sm:$0xff]  }
  0x34   : > { %v1448_v2 = vor.u32 %v1447_v61, %v1443_v58  ;;  %v1404_v10 = vrot.slane %v1402_v5, 1  ;;  %v1455_v12 = vshrl.u32 %v2526_v6, 16  ;;  %v1457_v13 = vshll.u32 %v2526_v6, 16  ;;  %v2529_v15 = vld [vmem:[%s2731_s9 + $0x2c] ss:$0 sps:$4 sm:$0x11]  }
  0x35   : > { %1046 = vrot.lane.b32.xlu1 %v1023_v30, %s2648_s13  ;;  %1038 = vrot.lane.b32.xlu0 %v975_v37, %s2648_s13  ;;  %v1400_v9 = vor.u32 %v1399_v4, %v1395_v60  ;;  %v1462_v14 = vshll.u32 %v2527_v7, 16  ;;  %v1407_v16 = vshrl.u32 %v2528_v8, 16  ;;  %v1409_v17 = vshll.u32 %v2528_v8, 16  ;;  %v2530_v21 = vld [vmem:[%s2731_s9 + $0x48] sm:$0xfe]   ;;  %v2536_v29 = vld [vmem:[%s2731_s9 + $0x18] sm:$0xff]  }
  0x36   : > { %v1453_v11 = vsel %vm508_vm1, %v1448_v2, %v1452_v3  ;;  %v1459_v18 = vrot.slane %v1457_v13, 1  ;;  %v1414_v20 = vshll.u32 %v2529_v15, 16  ;;  %v2534_v22 = vld [vmem:[%s2731_s9 + $0x48] sm:$0xff]   ;;  %v2531_v25 = vld [vmem:[%s2731_s9 + $0x50] ss:$0 sps:$4 sm:$0x11]  }
  0x37   : > { %v1464_v19 = vrot.slane %v1462_v14, 1  ;;  %v1405_v23 = vsel %vm508_vm1, %v1400_v9, %v1404_v10  ;;  %v1411_v24 = vrot.slane %v1409_v17, 1  ;;  %v1623_v28 = vrot.slane %v2530_v21, 1  ;;  %v2532_v32 = vld [vmem:[%s2731_s9 + $0x18] sm:$0xfe]   ;;  %v2544_v4 = vld [vmem:[%s2731_s9 + $0x24] sm:$0xff]  }
  0x38   : > { %v1460_v26 = vor.u32 %v1459_v18, %v1455_v12  ;;  %v1416_v27 = vrot.slane %v1414_v20, 1  ;;  %v1624_v31 = vrot.slane %v2531_v25, 1  ;;  %v2533_v33 = vld [vmem:[%s2731_s9 + $0x20] ss:$0 sps:$4 sm:$0x11]   ;;  %v1611_v36 = vrot.slane %v2532_v32, 1 }
  0x39   : > { %1198 = vrot.lane.b32.xlu1 %v1183_v38, %s2649_s14  ;;  %1190 = vrot.lane.b32.xlu0 %v1171_v43, %s2649_s14  ;;  %v1412_v30 = vor.u32 %v1411_v24, %v1407_v16  ;;  %v1612_v37 = vrot.slane %v2533_v33, 1  ;;  %v2535_v38 = vld [vmem:[%s2731_s9 + $0x50] ss:$0 sps:$4 sm:$0x11]   ;;  %v2542_v39 = vld [vmem:[%s2731_s9 + $0x54] sm:$0xff]   ;;  %v582_v41 = vshrl.u32 %v2534_v22, 16 }
  0x3a   : > { %v1465_v34 = vsel %vm508_vm1, %v1460_v26, %v1464_v19  ;;  %v1625_v40 = vsel %vm726_vm0, %v1623_v28, %v1624_v31  ;;  %v584_v42 = vshll.u32 %v2534_v22, 16  ;;  %v589_v43 = vshll.u32 %v2535_v38, 16  ;;  %v2537_v44 = vld [vmem:[%s2731_s9 + $0x20] ss:$0 sps:$4 sm:$0x11]  }
  0x3b   : > { %v1417_v35 = vsel %vm508_vm1, %v1412_v30, %v1416_v27  ;;  %v534_v46 = vshrl.u32 %v2536_v29, 16  ;;  %v536_v47 = vshll.u32 %v2536_v29, 16  ;;  %v594_v48 = vshrl.u32 %v2542_v39, 16  ;;  %v2540_v62 = vld [vmem:[%s2731_s9 + $0x24] sm:$0xfe]  }
  0x3c   : > { %v586_v45 = vrot.slane %v584_v42, 1  ;;  %v591_v50 = vrot.slane %v589_v43, 1  ;;  %v596_v57 = vshll.u32 %v2542_v39, 16  ;;  %v2541_v63 = vld [vmem:[%s2731_s9 + $0x2c] ss:$0 sps:$4 sm:$0x11]  }
  0x3d   : > { %1200 = vrot.lane.b32.xlu1 %v1186_v51, %s2649_s14  ;;  %1192 = vrot.lane.b32.xlu0 %v1174_v54, %s2649_s14  ;;  %v541_v51 = vshll.u32 %v2537_v44, 16  ;;  %v538_v53 = vrot.slane %v536_v47, 1  ;;  %v2538_v54 = vld [vmem:[%s2731_s9 + $0x54] sm:$0xfe]   ;;  %v1614_v3 = vrot.slane %v2540_v62, 1  ;;  %v1615_v5 = vrot.slane %v2541_v63, 1 }
  0x3e   : > { %v587_v52 = vor.u32 %v586_v45, %v582_v41  ;;  %v1626_v60 = vrot.slane %v2538_v54, 1  ;;  %v598_v0 = vrot.slane %v596_v57, 1  ;;  %v2543_v6 = vld [vmem:[%s2731_s9 + $0x5c] ss:$0 sps:$4 sm:$0x11]   ;;  %v546_v7 = vshrl.u32 %v2544_v4, 16 }
  0x3f   : > { %v539_v59 = vor.u32 %v538_v53, %v534_v46  ;;  %v548_v8 = vshll.u32 %v2544_v4, 16  ;;  %v1616_v9 = vsel %vm726_vm0, %v1614_v3, %v1615_v5  ;;  %v2545_v12 = vld [vmem:[%s2731_s9 + $0x2c] ss:$0 sps:$4 sm:$0x11]   ;;  %v2548_v22 = vld [vmem:[%s2731_s9 + $0x18] sm:$0xfe]  }
  0x40   : > { %v592_v58 = vsel %vm508_vm1, %v587_v52, %v591_v50  ;;  %v599_v10 = vor.u32 %v598_v0, %v594_v48  ;;  %v553_v15 = vshll.u32 %v2545_v12, 16  ;;  %v2546_v16 = vld [vmem:[%s2731_s9 + $0x48] sm:$0xfe]   ;;  %v2547_v18 = vld [vmem:[%s2731_s9 + $0x50] ss:$0 sps:$4 sm:$0x11]  }
  0x41   : > { %1288 = vrot.lane.b32.xlu1 %v2518_v49, %s2650_s16  ;;  %1280 = vrot.lane.b32.xlu0 %v2519_v55, %s2650_s16  ;;  %v1613_v49 = vsel %vm726_vm0, %v1611_v36, %v1612_v37  ;;  %v2539_v55 = vld [vmem:[%s2731_s9 + $0x5c] ss:$0 sps:$4 sm:$0x11]   ;;  %v550_v13 = vrot.slane %v548_v8, 1  ;;  %v745_v21 = vrot.slane %v2546_v16, 1  ;;  %v733_v26 = vrot.slane %v2548_v22, 1 }
  0x42   : > { %v1627_v61 = vrot.slane %v2539_v55, 1  ;;  %v555_v20 = vrot.slane %v553_v15, 1  ;;  %v2549_v24 = vld [vmem:[%s2731_s9 + $0x20] ss:$0 sps:$4 sm:$0x11]   ;;  %v2554_v39 = vld [vmem:[%s2731_s9 + $0x54] sm:$0xff]  }
  0x43   : > { %v551_v17 = vor.u32 %v550_v13, %v546_v7  ;;  %v734_v28 = vrot.slane %v2549_v24, 1  ;;  %v2550_v29 = vld [vmem:[%s2731_s9 + $0x54] sm:$0xfe]   ;;  %v2551_v30 = vld [vmem:[%s2731_s9 + $0x5c] ss:$0 sps:$4 sm:$0x11]  }
  0x44   : > { %v1628_v2 = vsel %vm726_vm0, %v1626_v60, %v1627_v61  ;;  %v748_v32 = vrot.slane %v2550_v29, 1  ;;  %v749_v33 = vrot.slane %v2551_v30, 1  ;;  %v2558_v42 = vld [vmem:[%s2731_s9 + $0x54] sm:$0xff]   ;;  %v2556_v43 = vld [vmem:[%s2890_s6] sm:$0xff]  }
  0x45   : > { %1290 = vrot.lane.b32.xlu1 %v2520_v56, %s2650_s16  ;;  %1282 = vrot.lane.b32.xlu0 %v2521_v1, %s2650_s16  ;;  %v543_v56 = vrot.slane %v541_v51, 1  ;;  %v556_v25 = vsel %vm508_vm1, %v551_v17, %v555_v20  ;;  %v735_v31 = vsel %vm726_vm0, %v733_v26, %v734_v28  ;;  %v2559_v44 = vld [vmem:[%s2731_s9 + $0x5c] ss:$0 sps:$4 sm:$0x11]   ;;  %v2560_v45 = vld [vmem:[%s2731_s9 + $0x24] sm:$0xff]   ;;  %v1025_v46 = vshrl.u32 %v2558_v42, 16 }
  0x46   : > { %v750_v36 = vsel %vm726_vm0, %v748_v32, %v749_v33  ;;  %v1027_v47 = vshll.u32 %v2558_v42, 16  ;;  %v2557_v48 = vld [vmem:[%s2731_s9 + $0x30] sm:$0xff]   ;;  %v2561_v50 = vld [vmem:[%s2731_s9 + $0x2c] ss:$0 sps:$4 sm:$0x11]   ;;  %v977_v51 = vshrl.u32 %v2560_v45, 16 }
  0x47   : > { %v544_v1 = vsel %vm508_vm1, %v539_v59, %v543_v56  ;;  %v979_v52 = vshll.u32 %v2560_v45, 16  ;;  %v2562_v54 = vld [vmem:[%s2890_s6] sm:$0xff]   ;;  %v984_v57 = vshll.u32 %v2561_v50, 16  ;;  %v2563_v60 = vld [vmem:[%s2890_s6 + $0x8] ss:$0 sps:$4 sm:$0x11]  }
  0x48   : > { %v1029_v53 = vrot.slane %v1027_v47, 1  ;;  %v1077_v61 = vshrl.u32 %v2562_v54, 16  ;;  %v1079_v62 = vshll.u32 %v2562_v54, 16  ;;  %v1084_v4 = vshll.u32 %v2563_v60, 16  ;;  %v2566_v12 = vld [vmem:[%s2731_s9 + $0x54] sm:$0xfe]  }
  0x49   : > { %1474 = vrot.lane.b32.xlu1 %v1453_v11, %s2651_s18  ;;  %1466 = vrot.lane.b32.xlu0 %v1405_v23, %s2651_s18  ;;  %v601_v11 = vshll.u32 %v2543_v6, 16  ;;  %v746_v23 = vrot.slane %v2547_v18, 1  ;;  %v981_v56 = vrot.slane %v979_v52, 1  ;;  %v986_v0 = vrot.slane %v984_v57, 1  ;;  %v2570_v26 = vld [vmem:[%s2890_s6] sm:$0xfe]  }
  0x4a   : > { %v1030_v59 = vor.u32 %v1029_v53, %v1025_v46  ;;  %v1081_v3 = vrot.slane %v1079_v62, 1  ;;  %v2565_v6 = vld [vmem:[%s2731_s9 + $0x38] ss:$0 sps:$4 sm:$0x11]   ;;  %v1187_v17 = vrot.slane %v2566_v12, 1  ;;  %v2580_v28 = vld [vmem:[%s2731_s9 + $0x30] sm:$0xff]  }
  0x4b   : > { %v603_v14 = vrot.slane %v601_v11, 1  ;;  %v747_v27 = vsel %vm726_vm0, %v745_v21, %v746_v23  ;;  %v982_v63 = vor.u32 %v981_v56, %v977_v51  ;;  %v996_v11 = vshll.u32 %v2565_v6, 16  ;;  %v2567_v13 = vld [vmem:[%s2731_s9 + $0x5c] ss:$0 sps:$4 sm:$0x11]   ;;  %v2578_v23 = vld [vmem:[%s2890_s6] sm:$0xff]  }
  0x4c   : > { %v1082_v8 = vor.u32 %v1081_v3, %v1077_v61  ;;  %v1188_v18 = vrot.slane %v2567_v13, 1  ;;  %v2569_v20 = vld [vmem:[%s2731_s9 + $0x2c] ss:$0 sps:$4 sm:$0x11]   ;;  %v1230_v30 = vrot.slane %v2570_v26, 1  ;;  %v2575_v42 = vld [vmem:[%s2731_s9 + $0x30] sm:$0xff]  }
  0x4d   : > { %1476 = vrot.lane.b32.xlu1 %v1465_v34, %s2651_s18  ;;  %1468 = vrot.lane.b32.xlu0 %v1417_v35, %s2651_s18  ;;  %v604_v19 = vsel %vm508_vm1, %v599_v10, %v603_v14  ;;  %v2552_v34 = vld [vmem:[%s2731_s9 + $0x24] sm:$0xfe]   ;;  %v2553_v35 = vld [vmem:[%s2731_s9 + $0x2c] ss:$0 sps:$4 sm:$0x11]   ;;  %v987_v7 = vsel %vm508_vm1, %v982_v63, %v986_v0  ;;  %v998_v16 = vrot.slane %v996_v11, 1 }
  0x4e   : > { %v736_v37 = vrot.slane %v2552_v34, 1  ;;  %v737_v38 = vrot.slane %v2553_v35, 1  ;;  %v1189_v24 = vsel %vm726_vm0, %v1187_v17, %v1188_v18  ;;  %v2572_v32 = vld [vmem:[%s2731_s9 + $0x30] sm:$0xfe]   ;;  %v1514_v34 = vshrl.u32 %v2578_v23, 16  ;;  %v2577_v52 = vld [vmem:[%s2731_s9 + $0x3c] sm:$0xff]  }
  0x4f   : > { %v2573_v33 = vld [vmem:[%s2731_s9 + $0x38] ss:$0 sps:$4 sm:$0x11]   ;;  %v2579_v45 = vld [vmem:[%s2890_s6 + $0x8] ss:$0 sps:$4 sm:$0x11]  }
  0x50   : > { %v738_v41 = vsel %vm726_vm0, %v736_v37, %v737_v38  ;;  %v1516_v37 = vshll.u32 %v2578_v23, 16  ;;  %v1179_v38 = vrot.slane %v2573_v33, 1  ;;  %v2582_v46 = vld [vmem:[%s2890_s6 + $0xc] sm:$0xff]   ;;  %v1521_v50 = vshll.u32 %v2579_v45, 16  ;;  %v2592_v33 = vld [vmem:[%s2731_s9 + $0x3c] sm:$0xfe]  }
  0x51   : > { %1637 = vrot.lane.b32.xlu1 %v1625_v40, %s2652_s19  ;;  %1629 = vrot.lane.b32.xlu0 %v1613_v49, %s2652_s19  ;;  %v2555_v40 = vld [vmem:[%s2731_s9 + $0x24] sm:$0xff]   ;;  %v1032_v49 = vshll.u32 %v2559_v44, 16  ;;  %v1421_v44 = vshll.u32 %v2580_v28, 16  ;;  %v2576_v47 = vld [vmem:[%s2890_s6 + $0xc] sm:$0xff]   ;;  %v1526_v53 = vshrl.u32 %v2582_v46, 16  ;;  %v1528_v54 = vshll.u32 %v2582_v46, 16 }
  0x52   : > { %v2581_v51 = vld [vmem:[%s2731_s9 + $0x38] ss:$0 sps:$4 sm:$0x11]   ;;  %v1523_v56 = vrot.slane %v1521_v50, 1  ;;  %v2588_v18 = vld [vmem:[%s2731_s9 + $0x30] sm:$0xfe]  }
  0x53   : > { %v1034_v55 = vrot.slane %v1032_v49, 1  ;;  %v2584_v49 = vld [vmem:[%s2731_s9 + $0x3c] sm:$0xff]   ;;  %v1426_v57 = vshll.u32 %v2581_v51, 16  ;;  %v1530_v60 = vrot.slane %v1528_v54, 1  ;;  %v2590_v23 = vld [vmem:[%s2890_s6 + $0xc] sm:$0xfe]  }
  0x54   : > { %v1433_v61 = vshll.u32 %v2584_v49, 16  ;;  %v2585_v3 = vld [vmem:[%s2731_s9 + $0x44] ss:$0 sps:$4 sm:$0x11]   ;;  %v2599_v45 = vld [vmem:[%s2731_s9 + $0x18] sm:$0xff]  }
  0x55   : > { %617 = vrot.lane.b32.xlu1 %v592_v58, %s2647_s12  ;;  %609 = vrot.lane.b32.xlu0 %v544_v1, %s2647_s12  ;;  %v2564_v58 = vld [vmem:[%s2731_s9 + $0x30] sm:$0xff]   ;;  %v1428_v63 = vrot.slane %v1426_v57, 1  ;;  %v1531_v6 = vor.u32 %v1530_v60, %v1526_v53  ;;  %v2600_v46 = vld [vmem:[%s3183_s2] sm:$0xff]   ;;  %414 = vst.msk [vmem:[#allocation2 + $0x10] sm:$0xff] %vm411_vm2, %v2599_v45 }
  0x56   : > { %v989_v1 = vshrl.u32 %v2564_v58, 16  ;;  %v991_v5 = vshll.u32 %v2564_v58, 16  ;;  %v2583_v58 = vld [vmem:[%s2890_s6 + $0x14] ss:$0 sps:$4 sm:$0x11]   ;;  %2401 = vmatprep.subr.bf16.mxu0 %v2600_v46  ;;  %v2603_v50 = vld [vmem:[%s2731_s9 + $0x24] sm:$0xff]   ;;  %2423 = vmatprep.subr.bf16.mxu1 %v2600_v46 }
  0x57   : > { %2402 = vmatpush3.bf16.msra.mxu0 %v2600_v46  ;;  %2426 = vmatpush3.bf16.msra.mxu1 %v2600_v46  ;;  %415 = vst.msk [vmem:[#allocation2 + $0x18] sm:$0xff] %vm411_vm2, %v2603_v50 }
  0x58   : > { %v993_v10 = vrot.slane %v991_v5, 1 }
  0x59   : > { %1639 = vrot.lane.b32.xlu1 %v1628_v2, %s2652_s19  ;;  %1631 = vrot.lane.b32.xlu0 %v1616_v9, %s2652_s19  ;;  %v1035_v2 = vsel %vm508_vm1, %v1030_v59, %v1034_v55  ;;  %v1086_v9 = vrot.slane %v1084_v4, 1  ;;  %v1431_v59 = vshrl.u32 %v2584_v49, 16  ;;  %v1435_v4 = vrot.slane %v1433_v61, 1 }
  0x5a   : > { %v994_v15 = vor.u32 %v993_v10, %v989_v1  ;;  %v1533_v1 = vshll.u32 %v2583_v58, 16  ;;  %v2587_v10 = vld [vmem:[%s2890_s6 + $0x8] ss:$0 sps:$4 sm:$0x11]  }
  0x5b   : > { %v1087_v14 = vsel %vm508_vm1, %v1082_v8, %v1086_v9  ;;  %v2586_v8 = vld [vmem:[%s2890_s6] sm:$0xfe]   ;;  %v1438_v9 = vshll.u32 %v2585_v3, 16  ;;  %v1436_v12 = vor.u32 %v1435_v4, %v1431_v59  ;;  %v1677_v17 = vrot.slane %v2587_v10, 1 }
  0x5c   : > { %v999_v21 = vsel %vm508_vm1, %v994_v15, %v998_v16 }
  0x5d   : > { %619 = vrot.lane.b32.xlu1 %v604_v19, %s2647_s12  ;;  %611 = vrot.lane.b32.xlu0 %v556_v25, %s2647_s12  ;;  %v2568_v19 = vld [vmem:[%s2731_s9 + $0x24] sm:$0xfe]   ;;  %v1176_v25 = vrot.slane %v2569_v20, 1  ;;  %v1440_v15 = vrot.slane %v1438_v9, 1 }
  0x5e   : > { %v1175_v22 = vrot.slane %v2568_v19, 1  ;;  %v2589_v20 = vld [vmem:[%s2731_s9 + $0x38] ss:$0 sps:$4 sm:$0x11]  }
  0x5f   : > { %v1618_v26 = vrot.slane %v2589_v20, 1 }
  0x60   : > { %v1177_v29 = vsel %vm726_vm0, %v1175_v22, %v1176_v25  ;;  %v1617_v22 = vrot.slane %v2588_v18, 1  ;;  %v1441_v25 = vsel %vm508_vm1, %v1436_v12, %v1440_v15 }
  0x61   : > { %763 = vrot.lane.b32.xlu1 %v747_v27, %s2646_s11  ;;  %755 = vrot.lane.b32.xlu0 %v735_v31, %s2646_s11  ;;  %v2571_v27 = vld [vmem:[%s2890_s6 + $0x8] ss:$0 sps:$4 sm:$0x11]  }
  0x62   : > { %v1231_v31 = vrot.slane %v2571_v27, 1 }
  0x64   : > { %v1232_v35 = vsel %vm726_vm0, %v1230_v30, %v1231_v31  ;;  %v2596_v30 = vld [vmem:[%s2731_s9 + $0x3c] sm:$0xff]  }
  0x65   : > { %765 = vrot.lane.b32.xlu1 %v750_v36, %s2646_s11  ;;  %757 = vrot.lane.b32.xlu0 %v738_v41, %s2646_s11  ;;  %v1178_v36 = vrot.slane %v2572_v32, 1  ;;  %417 = vst.msk [vmem:[#allocation2 + $0x28] sm:$0xff] %vm411_vm2, %v2596_v30 }
  0x67   : > { %v1180_v41 = vsel %vm726_vm0, %v1178_v36, %v1179_v38  ;;  %v1619_v36 = vsel %vm726_vm0, %v1617_v22, %v1618_v26 }
  0x69   : > { %846 = vrot.lane.b32.xlu1 %v2554_v39, %s2645_s10  ;;  %838 = vrot.lane.b32.xlu0 %v2555_v40, %s2645_s10  ;;  %v2574_v39 = vld [vmem:[%s2890_s6] sm:$0xff]   ;;  %v1419_v40 = vshrl.u32 %v2580_v28, 16  ;;  %v2591_v28 = vld [vmem:[%s2890_s6 + $0x14] ss:$0 sps:$4 sm:$0x11]  }
  0x6a   : > { %v1680_v32 = vrot.slane %v2591_v28, 1 }
  0x6d   : > { %870 = vrot.lane.b32.xlu1 %v2556_v43, %s2645_s10  ;;  %840 = vrot.lane.b32.xlu0 %v2557_v48, %s2645_s10  ;;  %v1518_v43 = vrot.slane %v1516_v37, 1  ;;  %v1423_v48 = vrot.slane %v1421_v44, 1  ;;  %v1620_v37 = vrot.slane %v2592_v33, 1 }
  0x6f   : > { %v1519_v55 = vor.u32 %v1518_v43, %v1514_v34  ;;  %v1424_v62 = vor.u32 %v1423_v48, %v1419_v40  ;;  %v2593_v34 = vld [vmem:[%s2731_s9 + $0x44] ss:$0 sps:$4 sm:$0x11]   ;;  %v2598_v43 = vld [vmem:[%s2731_s9 + $0x48] sm:$0xff]   ;;  %v2602_v48 = vld [vmem:[%s2731_s9 + $0x54] sm:$0xff]  }
  0x70   : > { %v1621_v38 = vrot.slane %v2593_v34, 1  ;;  %418 = vst.msk [vmem:[#allocation2 + $0x30] sm:$0xff] %vm411_vm2, %v2598_v43  ;;  %419 = vst.msk [vmem:[#allocation2 + $0x38] sm:$0xff] %vm411_vm2, %v2602_v48 }
  0x71   : > { %1048 = vrot.lane.b32.xlu1 %v1035_v2, %s2648_s13  ;;  %1040 = vrot.lane.b32.xlu0 %v987_v7, %s2648_s13  ;;  %v1524_v5 = vsel %vm508_vm1, %v1519_v55, %v1523_v56  ;;  %v1535_v7 = vrot.slane %v1533_v1, 1  ;;  %v1429_v11 = vsel %vm508_vm1, %v1424_v62, %v1428_v63 }
  0x72   : > { %v1622_v44 = vsel %vm726_vm0, %v1620_v37, %v1621_v38 }
  0x73   : > { %v1536_v19 = vsel %vm508_vm1, %v1531_v6, %v1535_v7 }
  0x75   : > { %1088 = vrot.lane.b32.xlu1 %v1087_v14, %s2648_s13  ;;  %1042 = vrot.lane.b32.xlu0 %v999_v21, %s2648_s13  ;;  %v1676_v14 = vrot.slane %v2586_v8, 1  ;;  %v2594_v21 = vld [vmem:[%s2731_s9 + $0xc] sm:$0xff]  }
  0x76   : > { %413 = vst.msk [vmem:[#allocation2 + $0x8] sm:$0xff] %vm411_vm2, %v2594_v21 }
  0x77   : > { %v1678_v31 = vsel %vm726_vm0, %v1676_v14, %v1677_v17 }
  0x79   : > { %1202 = vrot.lane.b32.xlu1 %v1189_v24, %s2649_s14  ;;  %1194 = vrot.lane.b32.xlu0 %v1177_v29, %s2649_s14  ;;  %v2595_v24 = vld [vmem:[%s2731_s9] sm:$0xff]   ;;  %v1679_v29 = vrot.slane %v2590_v23, 1 }
  0x7a   : > { %412 = vst.msk [vmem:[#allocation2] sm:$0xff] %vm411_vm2, %v2595_v24 }
  0x7b   : > { %v1681_v40 = vsel %vm726_vm0, %v1679_v29, %v1680_v32 }
  0x7d   : > { %1233 = vrot.lane.b32.xlu1 %v1232_v35, %s2649_s14  ;;  %1196 = vrot.lane.b32.xlu0 %v1180_v41, %s2649_s14  ;;  %v2597_v41 = vld [vmem:[%s2731_s9 + $0x30] sm:$0xff]   ;;  %s2108_s9 = sshll.u32 %s2627_s20, 4  ;;  %s1851_s14 = sld [smem:[#allocation3]] }
  0x7e   : > { %416 = vst.msk [vmem:[#allocation2 + $0x20] sm:$0xff] %vm411_vm2, %v2597_v41  ;;  %p339_p8 = scmp.lt.s32.totalorder %s2108_s9, 31 }
  0x80   : > { %s3203_s9 = smov (!%p339_p8, %s2108_s9), 31 }
  0x81   : > { %1319 = vrot.lane.b32.xlu1 %v2574_v39, %s2650_s16  ;;  %1284 = vrot.lane.b32.xlu0 %v2575_v42, %s2650_s16 }
  0x85   : > { %1321 = vrot.lane.b32.xlu1 %v2576_v47, %s2650_s16  ;;  %1286 = vrot.lane.b32.xlu0 %v2577_v52, %s2650_s16  ;;  %v2601_v47 = vld [vmem:[%s3183_s2 + $0x8] sm:$0xff]   ;;  %v2604_v52 = vld [vmem:[%s3183_s2 + $0x10] ss:$0 sps:$4 sm:$0x33]  }
  0x86   : > { %2403 = vmatprep.subr.bf16.mxu0 %v2601_v47  ;;  %2424 = vmatprep.subr.bf16.mxu1 %v2601_v47  ;;  %v1752_v53 = vsel %vm1750_vm6, %v2604_v52, 0 }
  0x87   : > { %2404 = vmatpush3.bf16.msra.mxu0 %v2601_v47  ;;  %2427 = vmatpush3.bf16.msra.mxu1 %v2601_v47 }
  0x88   : > { %2429 = vmatprep.subr.msk.bf16.mxu0 %vm1750_vm6, %v2604_v52  ;;  %2430 = vmatprep.subr.msk.bf16.mxu1 %vm1750_vm6, %v2604_v52  ;;  %v3092_v52 = vld [vmem:[%s3184_s3] ss:$0 sm:$0xff] }
  0x89   : > { %1537 = vrot.lane.b32.xlu1 %v1524_v5, %s2651_s18  ;;  %1470 = vrot.lane.b32.xlu0 %v1429_v11, %s2651_s18 }
  0x8b   : > { %v2948_v0 = vpop.permute.xlu1 %842  ;;  %v2951_v2 = vpop.permute.xlu0 %834  ;;  %2406 = vmatpush3.bf16.msra.mxu0 %v1752_v53  ;;  %2428 = vmatpush3.bf16.msra.mxu1 %v1752_v53  ;;  %v3094_v53 = vstv %s1851_s14 }
  0x8d   : > { %1539 = vrot.lane.b32.xlu1 %v1536_v19, %s2651_s18  ;;  %1472 = vrot.lane.b32.xlu0 %v1441_v25, %s2651_s18  ;;  %s342_s18 = sadd.s32 %s2109_s15, %s3203_s9 }
  0x8f   : > { %v2959_v13 = vpop.permute.xlu1 %844  ;;  %v2962_v16 = vpop.permute.xlu0 %836 }
  0x91   : > { %1682 = vrot.lane.b32.xlu1 %v1678_v31, %s2652_s19  ;;  %1633 = vrot.lane.b32.xlu0 %v1619_v36, %s2652_s19 }
  0x93   : > { %v2972_v27 = vpop.permute.xlu1 %759  ;;  %v752_v35 = vpop.permute.xlu0 %751 }
  0x95   : > { %1684 = vrot.lane.b32.xlu1 %v1681_v40, %s2652_s19  ;;  %1635 = vrot.lane.b32.xlu0 %v1622_v44, %s2652_s19  ;;  %s2110_s19 = sshll.u32 %s342_s18, 2 }
  0x96   : > { %s3106_s26 = scalar_lea.vmem %s3186_s5, %s2110_s19 }
  0x97   : > { %v762_v39 = vpop.permute.xlu1 %761  ;;  %v754_v42 = vpop.permute.xlu0 %753 }
  0x9b   : > { %v608_v49 = vpop.permute.xlu1 %607  ;;  %v606_v51 = vpop.permute.xlu0 %605 }
  0x9c   : > { %631 = vst.msk [vmem:[#allocation2 + $0x8] sm:$0xff] %vm629_vm3, %v608_v49  ;;  %630 = vst.msk [vmem:[#allocation2] sm:$0xff] %vm629_vm3, %v606_v51 }
  0x9d   : > { %777 = vst.msk [vmem:[#allocation2 + $0x8] sm:$0xff] %vm775_vm4, %v754_v42  ;;  %776 = vst.msk [vmem:[#allocation2] sm:$0xff] %vm775_vm4, %v752_v35 }
  0x9e   : > { %857 = vst.msk [vmem:[#allocation2 + $0x8] sm:$0xff] %vm855_vm5, %v2962_v16  ;;  %856 = vst.msk [vmem:[#allocation2] sm:$0xff] %vm855_vm5, %v2951_v2 }
  0x9f   : > { %v616_v54 = vpop.permute.xlu1 %615  ;;  %v614_v55 = vpop.permute.xlu0 %613 }
  0xa0   : > { %635 = vst.msk [vmem:[#allocation2 + $0x28] sm:$0xff] %vm629_vm3, %v616_v54  ;;  %634 = vst.msk [vmem:[#allocation2 + $0x20] sm:$0xff] %vm629_vm3, %v614_v55 }
  0xa1   : > { %781 = vst.msk [vmem:[#allocation2 + $0x28] sm:$0xff] %vm775_vm4, %v762_v39  ;;  %780 = vst.msk [vmem:[#allocation2 + $0x20] sm:$0xff] %vm775_vm4, %v2972_v27 }
  0xa2   : > { %861 = vst.msk [vmem:[#allocation2 + $0x28] sm:$0xff] %vm855_vm5, %v2959_v13  ;;  %860 = vst.msk [vmem:[#allocation2 + $0x20] sm:$0xff] %vm855_vm5, %v2948_v0 }
  0xa3   : > { %v1045_v56 = vpop.permute.xlu1 %1044  ;;  %v1037_v57 = vpop.permute.xlu0 %1036 }
  0xa4   : > { %1062 = vst.msk [vmem:[#allocation2 + $0x20] sm:$0xff] %vm1057_vm7, %v1045_v56  ;;  %1058 = vst.msk [vmem:[#allocation2] sm:$0xff] %vm1057_vm7, %v1037_v57 }
  0xa7   : > { %v1047_v58 = vpop.permute.xlu1 %1046  ;;  %v1039_v59 = vpop.permute.xlu0 %1038 }
  0xa8   : > { %1063 = vst.msk [vmem:[#allocation2 + $0x28] sm:$0xff] %vm1057_vm7, %v1047_v58  ;;  %1059 = vst.msk [vmem:[#allocation2 + $0x8] sm:$0xff] %vm1057_vm7, %v1039_v59 }
  0xab   : > { %v1199_v60 = vpop.permute.xlu1 %1198  ;;  %v1191_v61 = vpop.permute.xlu0 %1190 }
  0xac   : > { %1216 = vst.msk [vmem:[#allocation2 + $0x20] sm:$0xff] %vm1211_vm8, %v1199_v60  ;;  %1212 = vst.msk [vmem:[#allocation2] sm:$0xff] %vm1211_vm8, %v1191_v61 }
  0xaf   : > { %v1201_v62 = vpop.permute.xlu1 %1200  ;;  %v1193_v63 = vpop.permute.xlu0 %1192 }
  0xb0   : > { %1217 = vst.msk [vmem:[#allocation2 + $0x28] sm:$0xff] %vm1211_vm8, %v1201_v62  ;;  %1213 = vst.msk [vmem:[#allocation2 + $0x8] sm:$0xff] %vm1211_vm8, %v1193_v63 }
  0xb3   : > { %v1289_v0 = vpop.permute.xlu1 %1288  ;;  %v1281_v1 = vpop.permute.xlu0 %1280 }
  0xb4   : > { %1303 = vst.msk [vmem:[#allocation2 + $0x20] sm:$0xff] %vm1298_vm9, %v1289_v0  ;;  %1299 = vst.msk [vmem:[#allocation2] sm:$0xff] %vm1298_vm9, %v1281_v1 }
  0xb7   : > { %v1291_v2 = vpop.permute.xlu1 %1290  ;;  %v1283_v3 = vpop.permute.xlu0 %1282 }
  0xb8   : > { %1304 = vst.msk [vmem:[#allocation2 + $0x28] sm:$0xff] %vm1298_vm9, %v1291_v2  ;;  %1300 = vst.msk [vmem:[#allocation2 + $0x8] sm:$0xff] %vm1298_vm9, %v1283_v3 }
  0xbb   : > { %v1475_v4 = vpop.permute.xlu1 %1474  ;;  %v1467_v5 = vpop.permute.xlu0 %1466 }
  0xbc   : > { %1489 = vst.msk [vmem:[#allocation2 + $0x20] sm:$0xff] %vm1484_vm10, %v1475_v4  ;;  %1485 = vst.msk [vmem:[#allocation2] sm:$0xff] %vm1484_vm10, %v1467_v5 }
  0xbf   : > { %v1477_v6 = vpop.permute.xlu1 %1476  ;;  %v1469_v7 = vpop.permute.xlu0 %1468 }
  0xc0   : > { %1490 = vst.msk [vmem:[#allocation2 + $0x28] sm:$0xff] %vm1484_vm10, %v1477_v6  ;;  %1486 = vst.msk [vmem:[#allocation2 + $0x8] sm:$0xff] %vm1484_vm10, %v1469_v7 }
  0xc3   : > { %v1638_v8 = vpop.permute.xlu1 %1637  ;;  %v1630_v9 = vpop.permute.xlu0 %1629 }
  0xc4   : > { %1652 = vst.msk [vmem:[#allocation2 + $0x20] sm:$0xff] %vm1647_vm11, %v1638_v8  ;;  %1648 = vst.msk [vmem:[#allocation2] sm:$0xff] %vm1647_vm11, %v1630_v9 }
  0xc7   : > { %v618_v10 = vpop.permute.xlu1 %617  ;;  %v610_v11 = vpop.permute.xlu0 %609 }
  0xc8   : > { %636 = vst.msk [vmem:[#allocation2 + $0x30] sm:$0xff] %vm629_vm3, %v618_v10  ;;  %632 = vst.msk [vmem:[#allocation2 + $0x10] sm:$0xff] %vm629_vm3, %v610_v11 }
  0xcb   : > { %v1640_v12 = vpop.permute.xlu1 %1639  ;;  %v1694_v13 = vld [vmem:[#allocation2 + $0x20] sm:$0xff]  ;;  %v1632_v14 = vpop.permute.xlu0 %1631 }
  0xcc   : > { %1653 = vst.msk [vmem:[#allocation2 + $0x28] sm:$0xff] %vm1647_vm11, %v1640_v12  ;;  %2415 = vmatprep.mubr.msk.bf16.mxu1 %vm1725_vm12, %v1694_v13  ;;  %v1690_v15 = vld [vmem:[#allocation2] sm:$0xff]  ;;  %1649 = vst.msk [vmem:[#allocation2 + $0x8] sm:$0xff] %vm1647_vm11, %v1632_v14 }
  0xcd   : > { %2407 = vmatprep.mubr.msk.bf16.mxu0 %vm1725_vm12, %v1690_v15 }
  0xcf   : > { %v620_v16 = vpop.permute.xlu1 %619  ;;  %v612_v17 = vpop.permute.xlu0 %611 }
  0xd0   : > { %637 = vst.msk [vmem:[#allocation2 + $0x38] sm:$0xff] %vm629_vm3, %v620_v16  ;;  %633 = vst.msk [vmem:[#allocation2 + $0x18] sm:$0xff] %vm629_vm3, %v612_v17 }
  0xd3   : > { %v1695_v18 = vld [vmem:[#allocation2 + $0x28] sm:$0xff]  ;;  %v764_v19 = vpop.permute.xlu1 %763  ;;  %v756_v20 = vpop.permute.xlu0 %755 }
  0xd4   : > { %2416 = vmatmul.mubr.msk.bf16.vlgmr.msra.gmra.mrb[0].mxu1 %vm1725_vm12, %v1695_v18  ;;  %782 = vst.msk [vmem:[#allocation2 + $0x30] sm:$0xff] %vm775_vm4, %v764_v19  ;;  %v1691_v21 = vld [vmem:[#allocation2 + $0x8] sm:$0xff]  ;;  %778 = vst.msk [vmem:[#allocation2 + $0x10] sm:$0xff] %vm775_vm4, %v756_v20 }
  0xd5   : > { %2408 = vmatmul.mubr.msk.bf16.vlgmr.msra.gmra.mrb[0].mxu0 %vm1725_vm12, %v1691_v21 }
  0xd7   : > { %v766_v22 = vpop.permute.xlu1 %765  ;;  %v758_v23 = vpop.permute.xlu0 %757 }
  0xd8   : > { %783 = vst.msk [vmem:[#allocation2 + $0x38] sm:$0xff] %vm775_vm4, %v766_v22  ;;  %779 = vst.msk [vmem:[#allocation2 + $0x18] sm:$0xff] %vm775_vm4, %v758_v23 }
  0xdb   : > { %v847_v24 = vpop.permute.xlu1 %846  ;;  %v839_v25 = vpop.permute.xlu0 %838 }
  0xdc   : > { %862 = vst.msk [vmem:[#allocation2 + $0x30] sm:$0xff] %vm855_vm5, %v847_v24  ;;  %858 = vst.msk [vmem:[#allocation2 + $0x10] sm:$0xff] %vm855_vm5, %v839_v25 }
  0xdf   : > { %v871_v26 = vpop.permute.xlu1 %870  ;;  %v841_v27 = vpop.permute.xlu0 %840 }
  0xe0   : > { %874 = vst.msk [vmem:[#allocation2 + $0x38] sm:$0xff] %vm855_vm5, %v871_v26  ;;  %859 = vst.msk [vmem:[#allocation2 + $0x18] sm:$0xff] %vm855_vm5, %v841_v27 }
  0xe3   : > { %v1049_v28 = vpop.permute.xlu1 %1048  ;;  %v1041_v29 = vpop.permute.xlu0 %1040 }
  0xe4   : > { %1064 = vst.msk [vmem:[#allocation2 + $0x30] sm:$0xff] %vm1057_vm7, %v1049_v28  ;;  %1060 = vst.msk [vmem:[#allocation2 + $0x10] sm:$0xff] %vm1057_vm7, %v1041_v29 }
  0xe7   : > { %v1089_v30 = vpop.permute.xlu1 %1088  ;;  %v1043_v31 = vpop.permute.xlu0 %1042 }
  0xe8   : > { %1091 = vst.msk [vmem:[#allocation2 + $0x38] sm:$0xff] %vm1057_vm7, %v1089_v30  ;;  %1061 = vst.msk [vmem:[#allocation2 + $0x18] sm:$0xff] %vm1057_vm7, %v1043_v31 }
  0xeb   : > { %v1203_v32 = vpop.permute.xlu1 %1202  ;;  %v1195_v33 = vpop.permute.xlu0 %1194 }
  0xec   : > { %1218 = vst.msk [vmem:[#allocation2 + $0x30] sm:$0xff] %vm1211_vm8, %v1203_v32  ;;  %1214 = vst.msk [vmem:[#allocation2 + $0x10] sm:$0xff] %vm1211_vm8, %v1195_v33 }
  0xef   : > { %v1234_v34 = vpop.permute.xlu1 %1233  ;;  %v1197_v35 = vpop.permute.xlu0 %1196 }
  0xf0   : > { %1236 = vst.msk [vmem:[#allocation2 + $0x38] sm:$0xff] %vm1211_vm8, %v1234_v34  ;;  %1215 = vst.msk [vmem:[#allocation2 + $0x18] sm:$0xff] %vm1211_vm8, %v1197_v35 }
  0xf3   : > { %v1320_v36 = vpop.permute.xlu1 %1319  ;;  %v1285_v37 = vpop.permute.xlu0 %1284 }
  0xf4   : > { %1326 = vst.msk [vmem:[#allocation2 + $0x30] sm:$0xff] %vm1298_vm9, %v1320_v36  ;;  %1301 = vst.msk [vmem:[#allocation2 + $0x10] sm:$0xff] %vm1298_vm9, %v1285_v37 }
  0xf7   : > { %v1322_v38 = vpop.permute.xlu1 %1321  ;;  %v1287_v39 = vpop.permute.xlu0 %1286 }
  0xf8   : > { %1327 = vst.msk [vmem:[#allocation2 + $0x38] sm:$0xff] %vm1298_vm9, %v1322_v38  ;;  %1302 = vst.msk [vmem:[#allocation2 + $0x18] sm:$0xff] %vm1298_vm9, %v1287_v39 }
  0xfb   : > { %v1538_v40 = vpop.permute.xlu1 %1537  ;;  %v1471_v41 = vpop.permute.xlu0 %1470 }
  0xfc   : > { %1543 = vst.msk [vmem:[#allocation2 + $0x30] sm:$0xff] %vm1484_vm10, %v1538_v40  ;;  %1487 = vst.msk [vmem:[#allocation2 + $0x10] sm:$0xff] %vm1484_vm10, %v1471_v41 }
  0xff   : > { %v1540_v42 = vpop.permute.xlu1 %1539  ;;  %v1473_v43 = vpop.permute.xlu0 %1472 }
 0x100   : > { %1544 = vst.msk [vmem:[#allocation2 + $0x38] sm:$0xff] %vm1484_vm10, %v1540_v42  ;;  %1488 = vst.msk [vmem:[#allocation2 + $0x18] sm:$0xff] %vm1484_vm10, %v1473_v43 }
 0x103   : > { %v1683_v44 = vpop.permute.xlu1 %1682  ;;  %v1634_v45 = vpop.permute.xlu0 %1633 }
 0x104   : > { %1688 = vst.msk [vmem:[#allocation2 + $0x30] sm:$0xff] %vm1647_vm11, %v1683_v44  ;;  %1650 = vst.msk [vmem:[#allocation2 + $0x10] sm:$0xff] %vm1647_vm11, %v1634_v45 }
 0x107   : > { %v1685_v46 = vpop.permute.xlu1 %1684  ;;  %v1636_v47 = vpop.permute.xlu0 %1635 }
 0x108   : > { %1689 = vst.msk [vmem:[#allocation2 + $0x38] sm:$0xff] %vm1647_vm11, %v1685_v46  ;;  %1651 = vst.msk [vmem:[#allocation2 + $0x18] sm:$0xff] %vm1647_vm11, %v1636_v47 }
 0x10b   : > { %v1696_v48 = vld [vmem:[#allocation2 + $0x30] sm:$0xff] }
 0x10c   : > { %2419 = vmatprep.mubr.msk.bf16.mxu1 %vm1725_vm12, %v1696_v48  ;;  %v1692_v49 = vld [vmem:[#allocation2 + $0x10] sm:$0xff] }
 0x10d   : > { %2411 = vmatprep.mubr.msk.bf16.mxu0 %vm1725_vm12, %v1692_v49 }
 0x10f   : > { %v1697_v50 = vld [vmem:[#allocation2 + $0x38] sm:$0xff] }
 0x110   : > { %2420 = vmatmul.mubr.msk.bf16.gmra.mrb[4].mxu1 %vm1725_vm12, %v1697_v50  ;;  %v1693_v51 = vld [vmem:[#allocation2 + $0x18] sm:$0xff] }
 0x111   : > { %2412 = vmatmul.mubr.msk.bf16.gmra.mrb[4].mxu0 %vm1725_vm12, %v1693_v51 }
 0x1a7   : > { %v2417_v54 = vpop.f32.mrb[0].mxu1 }
 0x1a8   : > { %v1829_v55 = vadd.f32 %v2417_v54, %v3092_v52  ;;  %v1820_v56 = vpop.f32.mrb[1].mxu1  ;;  %v2409_v59 = vpop.f32.mrb[0].mxu0 }
 0x1a9   : > { %v1821_v57 = vadd.f32 %v3092_v52, %v1820_v56  ;;  %v2418_v58 = vpop.f32.mrb[2].mxu1  ;;  %v1797_v63 = vadd.f32 %v2409_v59, %v3092_v52  ;;  %v1788_v0 = vpop.f32.mrb[1].mxu0 }
 0x1aa   : > { %vm1862_vm14 = vcmp.ge.f32.partialorder %v1829_v55, 0.0  ;;  %v1879_v60 = vmul.f32 %v3094_v53, %v1829_v55  ;;  %v1832_v61 = vadd.f32 %v2418_v58, %v3092_v52  ;;  %v1823_v62 = vpop.f32.mrb[3].mxu1  ;;  %v1789_v4 = vadd.f32 %v3092_v52, %v1788_v0  ;;  %v2410_v5 = vpop.f32.mrb[2].mxu0 }
 0x1ab   : > { %vm1860_vm15 = vcmp.ge.f32.partialorder %v1821_v57, 0.0  ;;  %v1877_v1 = vmul.f32 %v3094_v53, %v1821_v57  ;;  %v1824_v2 = vadd.f32 %v3092_v52, %v1823_v62  ;;  %vm1854_vm1 = vcmp.ge.f32.partialorder %v1797_v63, 0.0  ;;  %v1791_v10 = vpop.f32.mrb[3].mxu0 }
 0x1ac   : > { %v1895_v3 = vsel %vm1862_vm14, %v1829_v55, %v1879_v60  ;;  %vm1863_vm0 = vcmp.ge.f32.partialorder %v1832_v61, 0.0  ;;  %v1880_v6 = vmul.f32 %v3094_v53, %v1832_v61  ;;  %v1871_v7 = vmul.f32 %v3094_v53, %v1797_v63 }
 0x1ad   : > { %v2382_v8 = vpack.c.bf16 %v1895_v3, %v1895_v3  ;;  %v1893_v9 = vsel %vm1860_vm15, %v1821_v57, %v1877_v1  ;;  %vm1852_vm2 = vcmp.ge.f32.partialorder %v1789_v4, 0.0  ;;  %v1869_v11 = vmul.f32 %v3094_v53, %v1789_v4 }
 0x1ae   : > { %v2380_v12 = vpack.c.bf16 %v1893_v9, %v1893_v9  ;;  %v1800_v13 = vadd.f32 %v2410_v5, %v3092_v52  ;;  %v1887_v14 = vsel %vm1854_vm1, %v1797_v63, %v1871_v7  ;;  %v1896_v15 = vsel %vm1863_vm0, %v1832_v61, %v1880_v6 }
 0x1af   : > { %1976 = vst.msk [vmem:[%s3106_s26 + $0x28] sm:$0xf] %vm1965_vm13, %v2382_v8  ;;  %v1792_v16 = vadd.f32 %v3092_v52, %v1791_v10  ;;  %vm1861_vm3 = vcmp.ge.f32.partialorder %v1824_v2, 0.0  ;;  %v2374_v17 = vpack.c.bf16 %v1887_v14, %v1887_v14  ;;  %v1885_v18 = vsel %vm1852_vm2, %v1789_v4, %v1869_v11 }
 0x1b0   : > { %1974 = vst.msk [vmem:[%s3106_s26 + $0x20] sm:$0xf] %vm1965_vm13, %v2380_v12  ;;  %vm1855_vm4 = vcmp.ge.f32.partialorder %v1800_v13, 0.0  ;;  %v1872_v19 = vmul.f32 %v3094_v53, %v1800_v13  ;;  %v2372_v20 = vpack.c.bf16 %v1885_v18, %v1885_v18  ;;  %v2383_v21 = vpack.c.bf16 %v1896_v15, %v1896_v15 }
 0x1b1   : > { %vm1853_vm5 = vcmp.ge.f32.partialorder %v1792_v16, 0.0  ;;  %v1870_v22 = vmul.f32 %v3094_v53, %v1792_v16  ;;  %1968 = vst.msk [vmem:[%s3106_s26 + $0x8] sm:$0xf] %vm1965_vm13, %v2374_v17  ;;  %v1878_v24 = vmul.f32 %v3094_v53, %v1824_v2 }
 0x1b2   : > { %v1888_v23 = vsel %vm1855_vm4, %v1800_v13, %v1872_v19  ;;  %1966 = vst.msk [vmem:[%s3106_s26] sm:$0xf] %vm1965_vm13, %v2372_v20  ;;  %1977 = vst.msk [vmem:[%s3106_s26 + $0x2c] sm:$0xf] %vm1965_vm13, %v2383_v21 }
 0x1b3   : > { %v2375_v25 = vpack.c.bf16 %v1888_v23, %v1888_v23  ;;  %v1886_v26 = vsel %vm1853_vm5, %v1792_v16, %v1870_v22  ;;  %v1894_v28 = vsel %vm1861_vm3, %v1824_v2, %v1878_v24 }
 0x1b4   : > { %v2373_v27 = vpack.c.bf16 %v1886_v26, %v1886_v26  ;;  %v2381_v29 = vpack.c.bf16 %v1894_v28, %v1894_v28 }
 0x1b5   : > { %1969 = vst.msk [vmem:[%s3106_s26 + $0xc] sm:$0xf] %vm1965_vm13, %v2375_v25 }
 0x1b6   : > { %1967 = vst.msk [vmem:[%s3106_s26 + $0x4] sm:$0xf] %vm1965_vm13, %v2373_v27  ;;  %1975 = vst.msk [vmem:[%s3106_s26 + $0x24] sm:$0xf] %vm1965_vm13, %v2381_v29 }
 0x1e3   : > { %v2421_v30 = vpop.f32.mrb[4].mxu1 }
 0x1e4   : > { %v1845_v31 = vadd.f32 %v2421_v30, %v3092_v52  ;;  %v1836_v32 = vpop.f32.mrb[5].mxu1  ;;  %v2413_v33 = vpop.f32.mrb[4].mxu0 }
 0x1e5   : > { %v1837_v34 = vadd.f32 %v3092_v52, %v1836_v32  ;;  %v2422_v35 = vpop.f32.mrb[6].mxu1  ;;  %v1813_v36 = vadd.f32 %v2413_v33, %v3092_v52  ;;  %v1804_v38 = vpop.f32.mrb[5].mxu0 }
 0x1e6   : > { %vm1866_vm6 = vcmp.ge.f32.partialorder %v1845_v31, 0.0  ;;  %v1883_v37 = vmul.f32 %v3094_v53, %v1845_v31  ;;  %v1848_v39 = vadd.f32 %v2422_v35, %v3092_v52  ;;  %v1839_v40 = vpop.f32.mrb[7].mxu1  ;;  %v1805_v41 = vadd.f32 %v3092_v52, %v1804_v38  ;;  %v2414_v43 = vpop.f32.mrb[6].mxu0 }
 0x1e7   : > { %vm1864_vm7 = vcmp.ge.f32.partialorder %v1837_v34, 0.0  ;;  %v1881_v42 = vmul.f32 %v3094_v53, %v1837_v34  ;;  %v1840_v44 = vadd.f32 %v3092_v52, %v1839_v40  ;;  %vm1858_vm8 = vcmp.ge.f32.partialorder %v1813_v36, 0.0  ;;  %v1807_v48 = vpop.f32.mrb[7].mxu0 }
 0x1e8   : > { %v1875_v45 = vmul.f32 %v3094_v53, %v1813_v36  ;;  %v1899_v46 = vsel %vm1866_vm6, %v1845_v31, %v1883_v37  ;;  %v1816_v47 = vadd.f32 %v2414_v43, %v3092_v52  ;;  %vm1856_vm9 = vcmp.ge.f32.partialorder %v1805_v41, 0.0 }
 0x1e9   : > { %v2386_v49 = vpack.c.bf16 %v1899_v46, %v1899_v46  ;;  %v1873_v50 = vmul.f32 %v3094_v53, %v1805_v41  ;;  %v1897_v51 = vsel %vm1864_vm7, %v1837_v34, %v1881_v42  ;;  %vm1867_vm11 = vcmp.ge.f32.partialorder %v1848_v39, 0.0 }
 0x1ea   : > { %v1891_v54 = vsel %vm1858_vm8, %v1813_v36, %v1875_v45  ;;  %v2384_v55 = vpack.c.bf16 %v1897_v51, %v1897_v51  ;;  %vm1859_vm10 = vcmp.ge.f32.partialorder %v1816_v47, 0.0  ;;  %v1876_v56 = vmul.f32 %v3094_v53, %v1816_v47 }
 0x1eb   : > { %v2378_v57 = vpack.c.bf16 %v1891_v54, %v1891_v54  ;;  %1980 = vst.msk [vmem:[%s3106_s26 + $0x38] sm:$0xf] %vm1965_vm13, %v2386_v49  ;;  %v1889_v58 = vsel %vm1856_vm9, %v1805_v41, %v1873_v50  ;;  %v1884_v59 = vmul.f32 %v3094_v53, %v1848_v39  ;;  %v1808_v62 = vadd.f32 %v3092_v52, %v1807_v48 }
 0x1ec   : > { %v2376_v60 = vpack.c.bf16 %v1889_v58, %v1889_v58  ;;  %1978 = vst.msk [vmem:[%s3106_s26 + $0x30] sm:$0xf] %vm1965_vm13, %v2384_v55  ;;  %v1892_v61 = vsel %vm1859_vm10, %v1816_v47, %v1876_v56  ;;  %vm1865_vm12 = vcmp.ge.f32.partialorder %v1840_v44, 0.0  ;;  %v1882_v1 = vmul.f32 %v3094_v53, %v1840_v44 }
 0x1ed   : > { %1972 = vst.msk [vmem:[%s3106_s26 + $0x18] sm:$0xf] %vm1965_vm13, %v2378_v57  ;;  %v2379_v63 = vpack.c.bf16 %v1892_v61, %v1892_v61  ;;  %v1900_v0 = vsel %vm1867_vm11, %v1848_v39, %v1884_v59  ;;  %vm1857_vm14 = vcmp.ge.f32.partialorder %v1808_v62, 0.0  ;;  %v1874_v3 = vmul.f32 %v3094_v53, %v1808_v62 }
 0x1ee   : > { %1970 = vst.msk [vmem:[%s3106_s26 + $0x10] sm:$0xf] %vm1965_vm13, %v2376_v60  ;;  %v2387_v2 = vpack.c.bf16 %v1900_v0, %v1900_v0  ;;  %v1898_v4 = vsel %vm1865_vm12, %v1840_v44, %v1882_v1 }
 0x1ef   : > { %1973 = vst.msk [vmem:[%s3106_s26 + $0x1c] sm:$0xf] %vm1965_vm13, %v2379_v63  ;;  %v1890_v52 = vsel %vm1857_vm14, %v1808_v62, %v1874_v3  ;;  %v2385_v5 = vpack.c.bf16 %v1898_v4, %v1898_v4 }
 0x1f0   : > { %1981 = vst.msk [vmem:[%s3106_s26 + $0x3c] sm:$0xf] %vm1965_vm13, %v2387_v2  ;;  %v2377_v6 = vpack.c.bf16 %v1890_v52, %v1890_v52 }
 0x1f1   : > { %1979 = vst.msk [vmem:[%s3106_s26 + $0x34] sm:$0xf] %vm1965_vm13, %v2385_v5 }
 0x1f2   : > { %1971 = vst.msk [vmem:[%s3106_s26 + $0x14] sm:$0xf] %vm1965_vm13, %v2377_v6 }
 0x1f3 PF: > { %s16_s24 = sadd.s32 1, %s2643_s24   ;;  %s3188_s20 = smov %s2635_s22 }
 0x1f4   : > { %p13_p9 = scmp.ge.s32.totalorder %s16_s24, 6   ;;  %s3189_s21 = smov %s2639_s23 }
 0x1f5   : > { %s3190_s22 = smov %s3193_s4  ;;  %s3191_s23 = smov %s3197_s25 }
 0x1f6   :  { %15 = sbr.rel (!%p13_p9) target bundleno = 3 (0x3), region = 77 }

</bundles_post_ra>
